<compile_context>
chip_gen: v7x
topology: tpu7x:2x2x1
jax: 0.10.0
libtpu: 0.0.40
codegen_flags: <defaults>
</compile_context>

<pallas_src>
import jax
import jax.numpy as jnp
from jax.experimental import pallas as pl
from jax.experimental.pallas import tpu as pltpu


def _round_up(v, m):
    return (v + m - 1) // m * m


def _make_kernel(offsets, tile_p):
    def kernel(xm_ref, xh_ref, w_ref, cb_ref, eb_ref, o_ref):
        # (Cin, tile_p + halo_blk) window: current tile + small halo window (bf16).
        x_wide = jnp.concatenate([xm_ref[0], xh_ref[0]], axis=-1)
        # Build the im2col patch tile in VMEM (K, tile_p); offsets are static Python ints.
        patch = jnp.concatenate(
            [x_wide[:, off:off + tile_p] for off in offsets], axis=0)
        # Conv as a single MXU matmul, f32 accumulation, lane-dense (Cout, tile_p) output.
        acc = jnp.dot(w_ref[...], patch, preferred_element_type=jnp.float32)
        z = acc + cb_ref[...]                                    # conv bias
        z = jnp.maximum(z, 0.0)                                  # relu
        z = 0.5 * z * (1.0 + jnp.tanh(0.7978845608 * (z + 0.044715 * z * z * z)))  # gelu
        z = 0.5 * (1.0 + jnp.tanh(0.5 * z))                      # sigmoid (single tanh)
        z = z + eb_ref[...]                                      # extra per-channel bias
        o_ref[0] = z.astype(o_ref.dtype)
    return kernel


@jax.jit
def fused_conv3d_act_bias(x, weight, conv_bias, extra_bias):
    """x: (N, Cin, D, H, W) f32; weight: (Cout, Cin, kd, kh, kw); biases per Cout."""
    N, Cin, D, H, W = x.shape
    Cout, _, kd, kh, kw = weight.shape
    Do, Ho, Wo = D - kd + 1, H - kh + 1, W - kw + 1
    P = D * H * W
    K = Cin * kd * kh * kw

    # Largest flattened shift needed by the conv window.
    halo = (kd - 1) * H * W + (kh - 1) * W + (kw - 1)
    # Small, 128-aligned halo window; main tile is a multiple of the halo window size so
    # the halo BlockSpec can address it with a plain block index.
    halo_blk = max(128, _round_up(halo, 128))
    tile_p = _round_up(max(min(P, 2048), halo_blk), halo_blk)
    n_tiles = pl.cdiv(P, tile_p)
    p_out = n_tiles * tile_p
    p_in = p_out + halo_blk            # only halo_blk extra zero padding (not a full tile)
    halo_ratio = tile_p // halo_blk    # static int: blocks-per-tile for the halo spec

    # ~1x input, bf16, zero-padded flat spatial axis (pure reshape of NCDHW — no im2col).
    x_flat = jnp.pad(x.astype(jnp.bfloat16).reshape(N, Cin, P),
                     ((0, 0), (0, 0), (0, p_in - P)))
    # Weight columns ordered (kd,kh,kw) major then Cin — matches the patch row order.
    w_flat = weight.transpose(0, 2, 3, 4, 1).reshape(Cout, K).astype(jnp.bfloat16)
    cb = conv_bias.reshape(Cout, 1).astype(jnp.float32)
    eb = extra_bias.reshape(Cout, 1).astype(jnp.float32)

    offsets = tuple(i * H * W + j * W + k
                    for i in range(kd) for j in range(kh) for k in range(kw))

    cost = pl.CostEstimate(
        flops=2 * N * p_out * K * Cout,
        transcendentals=2 * N * p_out * Cout,
        bytes_accessed=(N * Cin * (p_out + n_tiles * halo_blk) * 2
                        + w_flat.size * 2 + N * Cout * p_out * 4),
    )

    out_flat = pl.pallas_call(
        _make_kernel(offsets, tile_p),
        out_shape=jax.ShapeDtypeStruct((N, Cout, p_out), jnp.float32),
        grid=(N, n_tiles),
        in_specs=[
            # main tile
            pl.BlockSpec((1, Cin, tile_p), lambda n, t: (n, 0, t)),
            # small halo window starting exactly at the next tile boundary
            pl.BlockSpec((1, Cin, halo_blk),
                         lambda n, t: (n, 0, (t + 1) * halo_ratio)),
            pl.BlockSpec((Cout, K), lambda n, t: (0, 0)),
            pl.BlockSpec((Cout, 1), lambda n, t: (0, 0)),
            pl.BlockSpec((Cout, 1), lambda n, t: (0, 0)),
        ],
        out_specs=pl.BlockSpec((1, Cout, tile_p), lambda n, t: (n, 0, t)),
        compiler_params=pltpu.CompilerParams(
            dimension_semantics=("parallel", "parallel")),
        cost_estimate=cost,
    )(x_flat, x_flat, w_flat, cb, eb)

    # Flattened full-spatial result -> valid conv output (N, Cout, Do, Ho, Wo).
    out = out_flat[:, :, :P].reshape(N, Cout, D, H, W)
    return out[:, :, :Do, :Ho, :Wo]


def _reference(x, weight, conv_bias, extra_bias):
    y = jax.lax.conv_general_dilated(
        x, weight, window_strides=(1, 1, 1), padding="VALID",
        dimension_numbers=("NCDHW", "OIDHW", "NCDHW"))
    y = y + conv_bias.reshape(1, -1, 1, 1, 1)
    y = jnp.maximum(y, 0.0)
    y = 0.5 * y * (1.0 + jnp.tanh(0.7978845608 * (y + 0.044715 * y * y * y)))
    y = 1.0 / (1.0 + jnp.exp(-y))
    y = y + extra_bias.reshape(1, -1, 1, 1, 1)
    return y


if __name__ == "__main__":
    # Small shapes consistent with ModelNew(in_channels, out_channels, kernel_size, bias_shape)
    N, Cin, Cout, ks = 2, 3, 8, 3
    D = H = W = 8
    bias_shape = (Cout, 1, 1, 1)

    key = jax.random.PRNGKey(0)
    kx, kw_, kb, keb = jax.random.split(key, 4)

    x = jax.random.normal(kx, (N, Cin, D, H, W), dtype=jnp.float32)

    # deterministic Conv3d-style init: U(-1/sqrt(fan_in), 1/sqrt(fan_in))
    fan_in = Cin * ks * ks * ks
    bound = 1.0 / jnp.sqrt(jnp.float32(fan_in))
    weight = jax.random.uniform(kw_, (Cout, Cin, ks, ks, ks),
                                minval=-bound, maxval=bound, dtype=jnp.float32)
    conv_bias = jax.random.uniform(kb, (Cout,), minval=-bound, maxval=bound,
                                   dtype=jnp.float32)
    extra_bias = jax.random.normal(keb, bias_shape, dtype=jnp.float32)

    out = fused_conv3d_act_bias(x, weight, conv_bias, extra_bias)
    out = jax.block_until_ready(out)

    ref = _reference(x, weight, conv_bias, extra_bias)
    assert out.shape == (N, Cout, D - ks + 1, H - ks + 1, W - ks + 1), out.shape
    # bf16 matmul inputs (f32 accumulation) -> loosened absolute tolerance vs f32 reference.
    err = float(jnp.max(jnp.abs(out - ref)))
    assert err < 2e-2, err

    print("KERNEL_OK")
</pallas_src>

<mosaic_0001>
module attributes {stable_mosaic.version = 11 : i64} {
  func.func @kernel(%arg0: i32, %arg1: i32, %arg2: memref<1x3x512xbf16, #tpu.memory_space<vmem>>, %arg3: memref<1x3x256xbf16, #tpu.memory_space<vmem>>, %arg4: memref<8x81xbf16, #tpu.memory_space<vmem>>, %arg5: memref<8x1xf32, #tpu.memory_space<vmem>>, %arg6: memref<8x1xf32, #tpu.memory_space<vmem>>, %arg7: memref<1x8x512xf32, #tpu.memory_space<vmem>>) attributes {dimension_semantics = [#tpu.dimension_semantics<parallel>, #tpu.dimension_semantics<parallel>], iteration_bounds = array<i64: 2, 1>, scalar_prefetch = 0 : i64, scratch_operands = 0 : i64, tpu.core_type = #tpu.core_type<tc>, window_params = [{transform_indices = @transform_0, window_bounds = array<i64: 1, 3, 512>}, {transform_indices = @transform_1, window_bounds = array<i64: 1, 3, 256>}, {pipeline_mode = #tpu.pipeline_mode<synchronous>, transform_indices = @transform_2, window_bounds = array<i64: 8, 81>}, {pipeline_mode = #tpu.pipeline_mode<synchronous>, transform_indices = @transform_3, window_bounds = array<i64: 8, 1>}, {pipeline_mode = #tpu.pipeline_mode<synchronous>, transform_indices = @transform_4, window_bounds = array<i64: 8, 1>}, {transform_indices = @transform_5, window_bounds = array<i64: 1, 8, 512>}]} {
    %c0 = arith.constant 0 : index
    %c0_0 = arith.constant 0 : index
    %c0_1 = arith.constant 0 : index
    %0 = vector.load %arg2[%c0, %c0_0, %c0_1] : memref<1x3x512xbf16, #tpu.memory_space<vmem>>, vector<1x3x512xbf16>
    %1 = vector.shape_cast %0 : vector<1x3x512xbf16> to vector<3x512xbf16>
    %c0_2 = arith.constant 0 : index
    %c0_3 = arith.constant 0 : index
    %c0_4 = arith.constant 0 : index
    %2 = vector.load %arg3[%c0_2, %c0_3, %c0_4] : memref<1x3x256xbf16, #tpu.memory_space<vmem>>, vector<1x3x256xbf16>
    %3 = vector.shape_cast %2 : vector<1x3x256xbf16> to vector<3x256xbf16>
    %4 = tpu.concatenate %1, %3 in 1 : vector<3x512xbf16>, vector<3x256xbf16> -> vector<3x768xbf16>
    %5 = vector.extract_strided_slice %4 {offsets = [0, 0], sizes = [3, 512], strides = [1, 1]} : vector<3x768xbf16> to vector<3x512xbf16>
    %6 = vector.extract_strided_slice %4 {offsets = [0, 1], sizes = [3, 512], strides = [1, 1]} : vector<3x768xbf16> to vector<3x512xbf16>
    %7 = vector.extract_strided_slice %4 {offsets = [0, 2], sizes = [3, 512], strides = [1, 1]} : vector<3x768xbf16> to vector<3x512xbf16>
    %8 = vector.extract_strided_slice %4 {offsets = [0, 8], sizes = [3, 512], strides = [1, 1]} : vector<3x768xbf16> to vector<3x512xbf16>
    %9 = vector.extract_strided_slice %4 {offsets = [0, 9], sizes = [3, 512], strides = [1, 1]} : vector<3x768xbf16> to vector<3x512xbf16>
    %10 = vector.extract_strided_slice %4 {offsets = [0, 10], sizes = [3, 512], strides = [1, 1]} : vector<3x768xbf16> to vector<3x512xbf16>
    %11 = vector.extract_strided_slice %4 {offsets = [0, 16], sizes = [3, 512], strides = [1, 1]} : vector<3x768xbf16> to vector<3x512xbf16>
    %12 = vector.extract_strided_slice %4 {offsets = [0, 17], sizes = [3, 512], strides = [1, 1]} : vector<3x768xbf16> to vector<3x512xbf16>
    %13 = vector.extract_strided_slice %4 {offsets = [0, 18], sizes = [3, 512], strides = [1, 1]} : vector<3x768xbf16> to vector<3x512xbf16>
    %14 = vector.extract_strided_slice %4 {offsets = [0, 64], sizes = [3, 512], strides = [1, 1]} : vector<3x768xbf16> to vector<3x512xbf16>
    %15 = vector.extract_strided_slice %4 {offsets = [0, 65], sizes = [3, 512], strides = [1, 1]} : vector<3x768xbf16> to vector<3x512xbf16>
    %16 = vector.extract_strided_slice %4 {offsets = [0, 66], sizes = [3, 512], strides = [1, 1]} : vector<3x768xbf16> to vector<3x512xbf16>
    %17 = vector.extract_strided_slice %4 {offsets = [0, 72], sizes = [3, 512], strides = [1, 1]} : vector<3x768xbf16> to vector<3x512xbf16>
    %18 = vector.extract_strided_slice %4 {offsets = [0, 73], sizes = [3, 512], strides = [1, 1]} : vector<3x768xbf16> to vector<3x512xbf16>
    %19 = vector.extract_strided_slice %4 {offsets = [0, 74], sizes = [3, 512], strides = [1, 1]} : vector<3x768xbf16> to vector<3x512xbf16>
    %20 = vector.extract_strided_slice %4 {offsets = [0, 80], sizes = [3, 512], strides = [1, 1]} : vector<3x768xbf16> to vector<3x512xbf16>
    %21 = vector.extract_strided_slice %4 {offsets = [0, 81], sizes = [3, 512], strides = [1, 1]} : vector<3x768xbf16> to vector<3x512xbf16>
    %22 = vector.extract_strided_slice %4 {offsets = [0, 82], sizes = [3, 512], strides = [1, 1]} : vector<3x768xbf16> to vector<3x512xbf16>
    %23 = vector.extract_strided_slice %4 {offsets = [0, 128], sizes = [3, 512], strides = [1, 1]} : vector<3x768xbf16> to vector<3x512xbf16>
    %24 = vector.extract_strided_slice %4 {offsets = [0, 129], sizes = [3, 512], strides = [1, 1]} : vector<3x768xbf16> to vector<3x512xbf16>
    %25 = vector.extract_strided_slice %4 {offsets = [0, 130], sizes = [3, 512], strides = [1, 1]} : vector<3x768xbf16> to vector<3x512xbf16>
    %26 = vector.extract_strided_slice %4 {offsets = [0, 136], sizes = [3, 512], strides = [1, 1]} : vector<3x768xbf16> to vector<3x512xbf16>
    %27 = vector.extract_strided_slice %4 {offsets = [0, 137], sizes = [3, 512], strides = [1, 1]} : vector<3x768xbf16> to vector<3x512xbf16>
    %28 = vector.extract_strided_slice %4 {offsets = [0, 138], sizes = [3, 512], strides = [1, 1]} : vector<3x768xbf16> to vector<3x512xbf16>
    %29 = vector.extract_strided_slice %4 {offsets = [0, 144], sizes = [3, 512], strides = [1, 1]} : vector<3x768xbf16> to vector<3x512xbf16>
    %30 = vector.extract_strided_slice %4 {offsets = [0, 145], sizes = [3, 512], strides = [1, 1]} : vector<3x768xbf16> to vector<3x512xbf16>
    %31 = vector.extract_strided_slice %4 {offsets = [0, 146], sizes = [3, 512], strides = [1, 1]} : vector<3x768xbf16> to vector<3x512xbf16>
    %32 = tpu.concatenate %5, %6, %7, %8, %9, %10, %11, %12, %13, %14, %15, %16, %17, %18, %19, %20 in 0 : vector<3x512xbf16>, vector<3x512xbf16>, vector<3x512xbf16>, vector<3x512xbf16>, vector<3x512xbf16>, vector<3x512xbf16>, vector<3x512xbf16>, vector<3x512xbf16>, vector<3x512xbf16>, vector<3x512xbf16>, vector<3x512xbf16>, vector<3x512xbf16>, vector<3x512xbf16>, vector<3x512xbf16>, vector<3x512xbf16>, vector<3x512xbf16> -> vector<48x512xbf16>
    %33 = tpu.concatenate %21, %22, %23, %24, %25, %26, %27, %28, %29, %30, %31 in 0 : vector<3x512xbf16>, vector<3x512xbf16>, vector<3x512xbf16>, vector<3x512xbf16>, vector<3x512xbf16>, vector<3x512xbf16>, vector<3x512xbf16>, vector<3x512xbf16>, vector<3x512xbf16>, vector<3x512xbf16>, vector<3x512xbf16> -> vector<33x512xbf16>
    %34 = tpu.concatenate %32, %33 in 0 : vector<48x512xbf16>, vector<33x512xbf16> -> vector<81x512xbf16>
    %c0_5 = arith.constant 0 : index
    %c0_6 = arith.constant 0 : index
    %35 = vector.load %arg4[%c0_5, %c0_6] : memref<8x81xbf16, #tpu.memory_space<vmem>>, vector<8x81xbf16>
    %cst = arith.constant dense<0.000000e+00> : vector<8x512xf32>
    %36 = tpu.matmul %35, %34, %cst {dimension_numbers = #tpu.dot_dimension_numbers<[1], [0], [0], [1], [0, 0, 1, 1], [], []>} : vector<8x81xbf16>, vector<81x512xbf16>, vector<8x512xf32> -> vector<8x512xf32>
    %c0_7 = arith.constant 0 : index
    %c0_8 = arith.constant 0 : index
    %37 = vector.load %arg5[%c0_7, %c0_8] : memref<8x1xf32, #tpu.memory_space<vmem>>, vector<8x1xf32>
    %38 = vector.broadcast %37 : vector<8x1xf32> to vector<8x512xf32>
    %39 = arith.addf %36, %38 : vector<8x512xf32>
    %cst_9 = arith.constant 0.000000e+00 : f32
    %40 = vector.broadcast %cst_9 : f32 to vector<8x512xf32>
    %41 = arith.maximumf %39, %40 : vector<8x512xf32>
    %cst_10 = arith.constant 5.000000e-01 : f32
    %42 = vector.broadcast %cst_10 : f32 to vector<8x512xf32>
    %43 = arith.mulf %42, %41 : vector<8x512xf32>
    %cst_11 = arith.constant 4.471500e-02 : f32
    %44 = vector.broadcast %cst_11 : f32 to vector<8x512xf32>
    %45 = arith.mulf %44, %41 : vector<8x512xf32>
    %46 = arith.mulf %45, %41 : vector<8x512xf32>
    %47 = arith.mulf %46, %41 : vector<8x512xf32>
    %48 = arith.addf %41, %47 : vector<8x512xf32>
    %cst_12 = arith.constant 0.797884583 : f32
    %49 = vector.broadcast %cst_12 : f32 to vector<8x512xf32>
    %50 = arith.mulf %49, %48 : vector<8x512xf32>
    %51 = math.tanh %50 : vector<8x512xf32>
    %cst_13 = arith.constant 1.000000e+00 : f32
    %52 = vector.broadcast %cst_13 : f32 to vector<8x512xf32>
    %53 = arith.addf %52, %51 : vector<8x512xf32>
    %54 = arith.mulf %43, %53 : vector<8x512xf32>
    %cst_14 = arith.constant 5.000000e-01 : f32
    %55 = vector.broadcast %cst_14 : f32 to vector<8x512xf32>
    %56 = arith.mulf %55, %54 : vector<8x512xf32>
    %57 = math.tanh %56 : vector<8x512xf32>
    %cst_15 = arith.constant 1.000000e+00 : f32
    %58 = vector.broadcast %cst_15 : f32 to vector<8x512xf32>
    %59 = arith.addf %58, %57 : vector<8x512xf32>
    %cst_16 = arith.constant 5.000000e-01 : f32
    %60 = vector.broadcast %cst_16 : f32 to vector<8x512xf32>
    %61 = arith.mulf %60, %59 : vector<8x512xf32>
    %c0_17 = arith.constant 0 : index
    %c0_18 = arith.constant 0 : index
    %62 = vector.load %arg6[%c0_17, %c0_18] : memref<8x1xf32, #tpu.memory_space<vmem>>, vector<8x1xf32>
    %63 = vector.broadcast %62 : vector<8x1xf32> to vector<8x512xf32>
    %64 = arith.addf %61, %63 : vector<8x512xf32>
    %c0_19 = arith.constant 0 : index
    %c0_20 = arith.constant 0 : index
    %c0_21 = arith.constant 0 : index
    %65 = vector.load %arg7[%c0_19, %c0_20, %c0_21] : memref<1x8x512xf32, #tpu.memory_space<vmem>>, vector<1x8x512xf32>
    %66 = vector.shape_cast %65 : vector<1x8x512xf32> to vector<8x512xf32>
    %67 = vector.shape_cast %64 : vector<8x512xf32> to vector<1x8x512xf32>
    tpu.vector_store %arg7[%c0_19, %c0_20, %c0_21], %67 {strides = array<i32>} : memref<1x8x512xf32, #tpu.memory_space<vmem>>, vector<1x8x512xf32>,
    return
  }
  func.func @transform_0(%arg0: i32, %arg1: i32) -> (i32, i32, i32) {
    %c0_i32 = arith.constant 0 : i32
    %c0_i32_0 = arith.constant 0 : i32
    return %arg0, %c0_i32, %arg1 : i32, i32, i32
  }
  func.func @transform_1(%arg0: i32, %arg1: i32) -> (i32, i32, i32) {
    %c1_i32 = arith.constant 1 : i32
    %0 = arith.addi %arg1, %c1_i32 : i32
    %c2_i32 = arith.constant 2 : i32
    %1 = arith.muli %0, %c2_i32 : i32
    %c0_i32 = arith.constant 0 : i32
    %c0_i32_0 = arith.constant 0 : i32
    return %arg0, %c0_i32, %1 : i32, i32, i32
  }
  func.func @transform_2(%arg0: i32, %arg1: i32) -> (i32, i32) {
    %c0_i32 = arith.constant 0 : i32
    %c0_i32_0 = arith.constant 0 : i32
    %c0_i32_1 = arith.constant 0 : i32
    return %c0_i32, %c0_i32_0 : i32, i32
  }
  func.func @transform_3(%arg0: i32, %arg1: i32) -> (i32, i32) {
    %c0_i32 = arith.constant 0 : i32
    %c0_i32_0 = arith.constant 0 : i32
    %c0_i32_1 = arith.constant 0 : i32
    return %c0_i32, %c0_i32_0 : i32, i32
  }
  func.func @transform_4(%arg0: i32, %arg1: i32) -> (i32, i32) {
    %c0_i32 = arith.constant 0 : i32
    %c0_i32_0 = arith.constant 0 : i32
    %c0_i32_1 = arith.constant 0 : i32
    return %c0_i32, %c0_i32_0 : i32, i32
  }
  func.func @transform_5(%arg0: i32, %arg1: i32) -> (i32, i32, i32) {
    %c0_i32 = arith.constant 0 : i32
    %c0_i32_0 = arith.constant 0 : i32
    return %arg0, %c0_i32, %arg1 : i32, i32, i32
  }
}

</mosaic_0001>

<bundles_post_ra>
// kernel: fused_conv3d_act_bias.1
= control target key start
LH: loop header
LB: loop body
LE: loop exit
PB: predicated region body
PF: predicated region fallthrough
CT: control target
= control target key end

     0   :  { %s1788_s18 = smov 0   ;;  %s1790_s19 = smov 0   ;;  %s2793_s0 = inlined_call_operand.vmem [shape: bf16[2,3,768], index: 0, kind: input, shape index: {}, may-alias: {0,1}]   ;;  %s2794_s1 = inlined_call_operand.vmem [shape: bf16[2,3,768], index: 1, kind: input, shape index: {}, may-alias: {0,1}]   ;;  %s2795_s2 = inlined_call_operand.vmem [shape: bf16[8,81], index: 2, kind: input, shape index: {}]   ;;  %s2796_s3 = inlined_call_operand.vmem [shape: f32[8,1], index: 3, kind: input, shape index: {}]   ;;  %s2797_s4 = inlined_call_operand.vmem [shape: f32[8,1], index: 4, kind: input, shape index: {}]   ;;  %s2798_s5 = inlined_call_operand.vmem [shape: f32[2,8,512], index: 5, kind: output, shape index: {}]  }
   0x1   :  { %s1792_s20 = smov 0  }
   0x2 LB: > { %s27_s21 = sadd.s32 1, %s1727_s19  ;;  %p1605_p0 = scmp.ge.s32.totalorder %s1731_s20, 1  ;;  %s1731_s20 = sphi %s1792_s20, %s15_s20   ;;  %s1727_s19 = sphi %s1790_s19, %s2875_s19   ;;  %s1723_s18 = sphi %s1788_s18, %s2874_s18  }
   0x3   : > { %p29_p1 = scmp.ge.s32.totalorder %s27_s21, 2  ;;  %p241_p2 = scmp.lt.s32.totalorder %s1731_s20, 3 }
   0x5   : > { %s2877_s21 = smov (%p29_p1, %s27_s21), 0  ;;  %p242_p3 = pnand %p1605_p0, %p241_p2 }
   0x7   : > { %245 = sbr.rel (%p242_p3) target bundleno = 670 (0x29e), region = 40 }
   0xe   : > { %p297_p4 = scmp.lt.s32.totalorder %s1723_s18, 1  ;;  %v342_v0 = vlaneseq  ;;  %v1733_v1 = vmov 1983009808   ;;  %s1734_s30 = smov 81   ;;  %vm2810_vm0 = vcmask 662528   ;;  %vm2812_vm1 = vcmask 1041408  }
   0xf   : > { %v340_v2 = vunpack.c.l.s4 %v1733_v1  ;;  %s1735_s6 = smov 127   ;;  %s1736_s7 = smov 80   ;;  %vm815_vm2 = vsmask.f32 1280  ;;  %vm821_vm3 = vcmask 1042432   ;;  %vm419_vm4 = vcmask 1039360  }
  0x10   : > { %s2879_s18 = smov (!%p297_p4, %s1723_s18), 1  ;;  %v343_v3 = vshrl.u32 %v342_v0, 7  ;;  %s1737_s8 = smov 79   ;;  %vm2811_vm5 = vcmask 1044480   ;;  %vm839_vm6 = vsmask.f32 4352  ;;  %vm2227_vm7 = vmand %vm2812_vm1, %vm815_vm2 }
  0x11   : > { %v341_v4 = vunpack.c.0.s8 %v340_v2  ;;  %s1618_s22 = smul.u32 12, %s2879_s18  ;;  %s1738_s9 = smov 73   ;;  %vm1020_vm8 = vcmask 654336   ;;  %vm845_vm9 = vcmask 1045504   ;;  %vm1041_vm10 = vcmask 646144   ;;  %vm2279_vm15 = vmand %vm2811_vm5, %vm839_vm6 }
  0x12   : > { %s1739_s10 = smov 72   ;;  %s1740_s11 = smov 71   ;;  %vm1068_vm11 = vcmask 596992   ;;  %vm862_vm12 = vcmask 1047552   ;;  %vm863_vm13 = vsmask.f32 7424 }
  0x13   : > { %v344_v5 = vsub.s32 %v341_v4, %v343_v3  ;;  %s1616_s23 = sadd.s32 8, %s1618_s22  ;;  %s304_s26 = scalar_lea.vmem %s2793_s0, %s1618_s22  ;;  %vm1093_vm14 = vcmask 588800   ;;  %vm869_vm2 = vcmask 1040384   ;;  %vm1111_vm6 = vcmask 580608  }
  0x14   : > { %s320_s29 = scalar_lea.vmem %s2794_s1, %s1616_s23  ;;  %v335_v6 = vld [vmem:[%s304_s26] sm:$0xff]  ;;  %s1741_s12 = smov 65   ;;  %vm668_vm5 = vcmask 515072   ;;  %vm911_vm1 = vsmask.f32 5376 }
  0x15   : > { %v1815_v7 = vld.sshfl [vmem:[%s320_s29] sm:$0x33 pattern:$0x76325410]  ;;  %v338_v8 = vcombine.high %v335_v6, %v335_v6  ;;  %v1817_v9 = vrot.slane %v335_v6, %v344_v5  ;;  %s1742_s13 = smov 64   ;;  %s1743_s14 = smov 63  }
  0x16   : > { %v432_v10 = vrot.slane %v1815_v7, 5  ;;  %v1821_v11 = vshrl.u32 %v1815_v7, 16  ;;  %v1824_v12 = vshll.u32 %v1815_v7, 16  ;;  %v1887_v43 = vcombine.high %v1815_v7, %v1815_v7  ;;  %s1744_s15 = smov 126   ;;  %s1745_s16 = smov 120  }
  0x17   : > { %v1826_v13 = vrot.slane %v338_v8, %v344_v5  ;;  %v1830_v14 = vcombine.high %v1817_v9, %v1817_v9  ;;  %v1833_v15 = vshrl.u32 %v1817_v9, 16  ;;  %v1836_v16 = vshll.u32 %v1817_v9, 16  ;;  %s1746_s17 = smov 119   ;;  %s1747_s22 = smov 118  }
  0x18   : > { %996 = vrot.lane.b32.xlu0 %v432_v10, %s1734_s30  ;;  %v404_v17 = vrot.slane %v1821_v11, 6  ;;  %v407_v18 = vrot.slane %v1824_v12, 7  ;;  %v1895_v50 = vshrl.u32 %v1887_v43, 16  ;;  %v1898_v51 = vshll.u32 %v1887_v43, 16  ;;  %s1748_s23 = smov 112   ;;  %s1749_s24 = smov 111  }
  0x19   : > { %v429_v19 = vrot.slane %v1830_v14, 5  ;;  %v430_v20 = vrot.slane %v1826_v13, 5  ;;  %v372_v21 = vrot.slane %v1833_v15, 6  ;;  %v375_v22 = vrot.slane %v1836_v16, 7  ;;  %s1750_s25 = smov 110   ;;  %s1751_s26 = smov 62  }
  0x1a   : > { %v1848_v23 = vcombine.high %v1826_v13, %v1826_v13  ;;  %v1851_v24 = vshrl.u32 %v1830_v14, 16  ;;  %v1854_v25 = vshll.u32 %v1830_v14, 16  ;;  %v408_v26 = vor.u32 %v407_v18, %v404_v17  ;;  %s1752_s27 = smov 56   ;;  %s1753_s28 = smov 55  }
  0x1b   : > { %990 = vrot.lane.b32.xlu1 %v429_v19, %s1734_s30  ;;  %v376_v27 = vor.u32 %v375_v22, %v372_v21  ;;  %v1863_v30 = vshrl.u32 %v1826_v13, 16  ;;  %v1866_v31 = vshll.u32 %v1826_v13, 16  ;;  %v460_v53 = vrot.slane %v1821_v11, 3  ;;  %s1754_s29 = smov 54  }
  0x1c   : > { %992 = vrot.lane.b32.xlu0 %v430_v20, %s1734_s30  ;;  %v380_v28 = vrot.slane %v1851_v24, 6  ;;  %v383_v29 = vrot.slane %v1854_v25, 7  ;;  %v431_v32 = vrot.slane %v1848_v23, 5  ;;  %v451_v33 = vrot.slane %v1851_v24, 3 }
  0x1d   : > { %v452_v34 = vrot.slane %v1854_v25, 4  ;;  %v1872_v35 = vshrl.u32 %v1848_v23, 16  ;;  %v1875_v36 = vshll.u32 %v1848_v23, 16  ;;  %v388_v38 = vrot.slane %v1863_v30, 6 }
  0x1e   : > { %v384_v37 = vor.u32 %v383_v29, %v380_v28  ;;  %v391_v39 = vrot.slane %v1866_v31, 7  ;;  %v454_v45 = vrot.slane %v1863_v30, 3  ;;  %v455_v46 = vrot.slane %v1866_v31, 4 }
  0x1f   : > { %417 = vrot.lane.b32.xlu1 %v408_v26, %s1735_s6  ;;  %v1881_v40 = vor.u32 %v452_v34, %v451_v33  ;;  %v396_v41 = vrot.slane %v1872_v35, 6  ;;  %v399_v42 = vrot.slane %v1875_v36, 7  ;;  %v457_v47 = vrot.slane %v1872_v35, 3 }
  0x20   : > { %409 = vrot.lane.b32.xlu0 %v376_v27, %s1735_s6  ;;  %v392_v44 = vor.u32 %v391_v39, %v388_v38  ;;  %v458_v49 = vrot.slane %v1875_v36, 4  ;;  %v1900_v52 = vor.u32 %v455_v46, %v454_v45  ;;  %v461_v54 = vrot.slane %v1824_v12, 4 }
  0x21   : > { %v400_v48 = vor.u32 %v399_v42, %v396_v41  ;;  %v1005_v56 = vrot.slane %v1895_v50, 3  ;;  %v1008_v57 = vrot.slane %v1898_v51, 4  ;;  %v1137_v59 = vrot.slane %v1895_v50, 2 }
  0x22   : > { %v1904_v55 = vor.u32 %v458_v49, %v457_v47  ;;  %v1909_v58 = vor.u32 %v461_v54, %v460_v53  ;;  %v1138_v60 = vrot.slane %v1898_v51, 3  ;;  %v483_v62 = vrot.slane %v1830_v14, 2 }
  0x23   : > { %994 = vrot.lane.b32.xlu1 %v431_v32, %s1734_s30  ;;  %v1009_v61 = vor.u32 %v1008_v57, %v1005_v56  ;;  %v503_v0 = vrot.slane %v1854_v25, 1  ;;  %v504_v1 = vrot.slane %v1866_v31, 1  ;;  %v505_v2 = vrot.slane %v1875_v36, 1  ;;  %s1755_s30 = smov 48  }
  0x24   : > { %411 = vrot.lane.b32.xlu0 %v384_v37, %s1735_s6  ;;  %v1916_v63 = vor.u32 %v1138_v60, %v1137_v59  ;;  %v506_v3 = vrot.slane %v1824_v12, 1  ;;  %v484_v4 = vrot.slane %v1826_v13, 2  ;;  %v485_v8 = vrot.slane %v1848_v23, 2 }
  0x25   : > { %v1923_v5 = vpack.i.bf16 %v504_v1, %v503_v0  ;;  %v486_v17 = vrot.slane %v1815_v7, 2  ;;  %v1030_v18 = vrot.slane %v1887_v43, 2  ;;  %v1046_v21 = vrot.slane %v1898_v51, 1 }
  0x26   : > { %v1925_v6 = vpack.i.bf16 %v506_v3, %v505_v2  ;;  %v1942_v22 = vor.u32 %v503_v0, %v1851_v24  ;;  %v1945_v26 = vor.u32 %v504_v1, %v1863_v30  ;;  %v1949_v27 = vor.u32 %v505_v2, %v1872_v35 }
  0x27   : > { %1010 = vrot.lane.b32.xlu1 %v1881_v40, %s1736_s7  ;;  %v1953_v28 = vor.u32 %v506_v3, %v1821_v11  ;;  %v1047_v29 = vor.u32 %v1046_v21, %v1895_v50  ;;  %v546_v33 = vrot.slane %v1830_v14, 7  ;;  %v547_v34 = vrot.slane %v1826_v13, 7 }
  0x28   : > { %413 = vrot.lane.b32.xlu0 %v392_v44, %s1735_s6  ;;  %v548_v37 = vrot.slane %v1848_v23, 7  ;;  %v549_v38 = vrot.slane %v1815_v7, 7  ;;  %v568_v39 = vrot.slane %v1851_v24, 5  ;;  %v569_v41 = vrot.slane %v1854_v25, 6 }
  0x29   : > { %v1082_v42 = vrot.slane %v1887_v43, 7  ;;  %v571_v44 = vrot.slane %v1863_v30, 5  ;;  %v572_v45 = vrot.slane %v1866_v31, 6  ;;  %v574_v47 = vrot.slane %v1872_v35, 5 }
  0x2a   : > { %v1975_v46 = vor.u32 %v569_v41, %v568_v39  ;;  %v577_v53 = vrot.slane %v1821_v11, 5  ;;  %v578_v54 = vrot.slane %v1824_v12, 6  ;;  %v1098_v57 = vrot.slane %v1895_v50, 5 }
  0x2b   : > { %415 = vrot.lane.b32.xlu1 %v400_v48, %s1735_s6  ;;  %v575_v48 = vrot.slane %v1875_v36, 6  ;;  %v1979_v49 = vor.u32 %v572_v45, %v571_v44  ;;  %v1099_v59 = vrot.slane %v1898_v51, 6  ;;  %v601_v0 = vrot.slane %v1826_v13, 4  ;;  %s1756_s6 = smov 47  }
  0x2c   : > { %1012 = vrot.lane.b32.xlu0 %v1900_v52, %s1736_s7  ;;  %v1989_v60 = vor.u32 %v578_v54, %v577_v53  ;;  %v603_v50 = vrot.slane %v1815_v7, 4  ;;  %v622_v51 = vrot.slane %v1851_v24, 2  ;;  %v623_v1 = vrot.slane %v1854_v25, 3 }
  0x2d   : > { %v1984_v56 = vor.u32 %v575_v48, %v574_v47  ;;  %v625_v2 = vrot.slane %v1863_v30, 2  ;;  %v626_v3 = vrot.slane %v1866_v31, 3  ;;  %v631_v41 = vrot.slane %v1821_v11, 2 }
  0x2e   : > { %v654_v47 = vrot.slane %v1830_v14, 1  ;;  %v655_v48 = vrot.slane %v1826_v13, 1  ;;  %v656_v53 = vrot.slane %v1848_v23, 1  ;;  %v657_v54 = vrot.slane %v1815_v7, 1 }
  0x2f   : > { %1014 = vrot.lane.b32.xlu1 %v1904_v55, %s1736_s7  ;;  %v627_v39 = vor.u32 %v626_v3, %v625_v2 }
  0x30   : > { %1016 = vrot.lane.b32.xlu0 %v1909_v58, %s1736_s7 }
  0x33   : > { %1018 = vrot.lane.b32.xlu1 %v1009_v61, %s1736_s7  ;;  %v1100_v61 = vor.u32 %v1099_v59, %v1098_v57  ;;  %v1145_v57 = vrot.slane %v1887_v43, 1  ;;  %v448_v59 = vrot.slane %v1833_v15, 3 }
  0x34   : > { %1031 = vrot.lane.b32.xlu0 %v483_v62, %s1737_s8 }
  0x37   : > { %1033 = vrot.lane.b32.xlu1 %v484_v4, %s1737_s8 }
  0x38   : > { %1035 = vrot.lane.b32.xlu0 %v485_v8, %s1737_s8 }
  0x3b   : > { %1037 = vrot.lane.b32.xlu1 %v486_v17, %s1737_s8 }
  0x3c   : > { %1039 = vrot.lane.b32.xlu0 %v1030_v18, %s1737_s8  ;;  %v624_v18 = vor.u32 %v623_v1, %v622_v51 }
  0x3f   : > { %1671 = vrot.lane.b32.xlu1 %v1923_v5, %s1738_s9 }
  0x40   : > { %1676 = vrot.lane.b32.xlu0 %v1925_v6, %s1738_s9 }
  0x43   : > { %1056 = vrot.lane.b32.xlu1 %v1046_v21, %s1738_s9  ;;  %v628_v21 = vrot.slane %v1872_v35, 2 }
  0x44   : > { %1058 = vrot.lane.b32.xlu0 %v1942_v22, %s1738_s9 }
  0x47   : > { %1060 = vrot.lane.b32.xlu1 %v1945_v26, %s1738_s9 }
  0x48   : > { %1062 = vrot.lane.b32.xlu0 %v1949_v27, %s1738_s9 }
  0x4b   : > { %1064 = vrot.lane.b32.xlu1 %v1953_v28, %s1738_s9 }
  0x4c   : > { %1066 = vrot.lane.b32.xlu0 %v1047_v29, %s1738_s9  ;;  %v629_v29 = vrot.slane %v1875_v36, 3 }
  0x4e   : > { %v630_v44 = vor.u32 %v629_v29, %v628_v21 }
  0x4f   : > { %1083 = vrot.lane.b32.xlu1 %v546_v33, %s1739_s10 }
  0x50   : > { %1085 = vrot.lane.b32.xlu0 %v547_v34, %s1739_s10 }
  0x53   : > { %1087 = vrot.lane.b32.xlu1 %v548_v37, %s1739_s10 }
  0x54   : > { %1089 = vrot.lane.b32.xlu0 %v549_v38, %s1739_s10 }
  0x57   : > { %1091 = vrot.lane.b32.xlu1 %v1082_v42, %s1739_s10  ;;  %v632_v42 = vrot.slane %v1824_v12, 3 }
  0x58   : > { %1101 = vrot.lane.b32.xlu0 %v1975_v46, %s1740_s11 }
  0x59   : > { %v633_v45 = vor.u32 %v632_v42, %v631_v41 }
  0x5b   : > { %1103 = vrot.lane.b32.xlu1 %v1979_v49, %s1740_s11 }
  0x5c   : > { %1105 = vrot.lane.b32.xlu0 %v1984_v56, %s1740_s11 }
  0x5f   : > { %1107 = vrot.lane.b32.xlu1 %v1989_v60, %s1740_s11 }
  0x60   : > { %1109 = vrot.lane.b32.xlu0 %v1100_v61, %s1740_s11 }
  0x63   : > { %1122 = vrot.lane.b32.xlu1 %v1830_v14, %s1741_s12 }
  0x64   : > { %1124 = vrot.lane.b32.xlu0 %v601_v0, %s1741_s12 }
  0x67   : > { %1126 = vrot.lane.b32.xlu1 %v1848_v23, %s1741_s12 }
  0x68   : > { %1128 = vrot.lane.b32.xlu0 %v603_v50, %s1741_s12 }
  0x6b   : > { %1130 = vrot.lane.b32.xlu1 %v1887_v43, %s1741_s12 }
  0x6c   : > { %636 = vrot.lane.b32.xlu0 %v624_v18, %s1742_s13 }
  0x6f   : > { %638 = vrot.lane.b32.xlu1 %v627_v39, %s1742_s13 }
  0x70   : > { %640 = vrot.lane.b32.xlu0 %v630_v44, %s1742_s13 }
  0x73   : > { %642 = vrot.lane.b32.xlu1 %v633_v45, %s1742_s13 }
  0x74   : > { %1140 = vrot.lane.b32.xlu0 %v1916_v63, %s1742_s13  ;;  %v428_v63 = vrot.slane %v1817_v9, 5 }
  0x77   : > { %660 = vrot.lane.b32.xlu1 %v654_v47, %s1743_s14 }
  0x78   : > { %662 = vrot.lane.b32.xlu0 %v655_v48, %s1743_s14 }
  0x7b   : > { %664 = vrot.lane.b32.xlu1 %v656_v53, %s1743_s14 }
  0x7c   : > { %666 = vrot.lane.b32.xlu0 %v657_v54, %s1743_s14  ;;  %v679_v54 = vrot.slane %v1851_v24, 7 }
  0x7f   : > { %1146 = vrot.lane.b32.xlu1 %v1145_v57, %s1743_s14 }
  0x80   : > { %435 = vrot.lane.b32.xlu0 %v429_v19, %s1744_s15  ;;  %v449_v19 = vrot.slane %v1836_v16, 4 }
  0x82   : > { %v450_v61 = vor.u32 %v449_v19, %v448_v59  ;;  %v680_v19 = vor.u32 %v679_v54, %v1854_v25 }
  0x83   : > { %437 = vrot.lane.b32.xlu1 %v430_v20, %s1744_s15 }
  0x84   : > { %439 = vrot.lane.b32.xlu0 %v431_v32, %s1744_s15 }
  0x87   : > { %441 = vrot.lane.b32.xlu1 %v432_v10, %s1744_s15 }
  0x88   : > { %433 = vrot.lane.b32.xlu0 %v428_v63, %s1744_s15 }
  0x8a   : > { %v2035_v43 = vpop.permute.xlu0 %996 }
  0x8b   : > { %465 = vrot.lane.b32.xlu1 %v1881_v40, %s1745_s16 }
  0x8c   : > { %467 = vrot.lane.b32.xlu0 %v1900_v52, %s1745_s16 }
  0x8d   : > { %v2041_v20 = vpop.permute.xlu1 %990 }
  0x8e   : > { %v2043_v32 = vpop.permute.xlu0 %992 }
  0x8f   : > { %469 = vrot.lane.b32.xlu1 %v1904_v55, %s1745_s16  ;;  %v482_v55 = vrot.slane %v1817_v9, 2 }
  0x90   : > { %471 = vrot.lane.b32.xlu0 %v1909_v58, %s1745_s16 }
  0x91   : > { %v2047_v10 = vpop.permute.xlu1 %417 }
  0x92   : > { %v2049_v51 = vpop.permute.xlu0 %409 }
  0x93   : > { %463 = vrot.lane.b32.xlu1 %v450_v61, %s1745_s16  ;;  %v683_v61 = vrot.slane %v1872_v35, 7 }
  0x94   : > { %489 = vrot.lane.b32.xlu0 %v483_v62, %s1746_s17 }
  0x95   : > { %v2053_v40 = vpop.permute.xlu1 %994 }
  0x96   : > { %v2055_v52 = vpop.permute.xlu0 %411 }
  0x97   : > { %491 = vrot.lane.b32.xlu1 %v484_v4, %s1746_s17 }
  0x98   : > { %493 = vrot.lane.b32.xlu0 %v485_v8, %s1746_s17 }
  0x99   : > { %v2062_v58 = vpop.permute.xlu1 %1010 }
  0x9a   : > { %v2064_v1 = vpop.permute.xlu0 %413 }
  0x9b   : > { %495 = vrot.lane.b32.xlu1 %v486_v17, %s1746_s17 }
  0x9c   : > { %487 = vrot.lane.b32.xlu0 %v482_v55, %s1746_s17 }
  0x9d   : > { %v2068_v62 = vpop.permute.xlu1 %415 }
  0x9e   : > { %v2070_v2 = vpop.permute.xlu0 %1012 }
  0x9f   : > { %1681 = vrot.lane.b32.xlu1 %v1923_v5, %s1747_s22 }
  0xa0   : > { %1686 = vrot.lane.b32.xlu0 %v1925_v6, %s1747_s22  ;;  %v502_v6 = vrot.slane %v1836_v16, 1 }
  0xa1   : > { %v2074_v4 = vpop.permute.xlu1 %1014 }
  0xa2   : > { %v2076_v8 = vpop.permute.xlu0 %1016 }
  0xa3   : > { %524 = vrot.lane.b32.xlu1 %v1942_v22, %s1747_s22 }
  0xa4   : > { %526 = vrot.lane.b32.xlu0 %v1945_v26, %s1747_s22 }
  0xa5   : > { %v2080_v3 = vpop.permute.xlu1 %1018 }
  0xa6   : > { %v2082_v17 = vpop.permute.xlu0 %1031 }
  0xa7   : > { %528 = vrot.lane.b32.xlu1 %v1949_v27, %s1747_s22  ;;  %v507_v27 = vor.u32 %v502_v6, %v1833_v15 }
  0xa8   : > { %530 = vrot.lane.b32.xlu0 %v1953_v28, %s1747_s22 }
  0xa9   : > { %v2086_v18 = vpop.permute.xlu1 %1033 }
  0xaa   : > { %v2088_v5 = vpop.permute.xlu0 %1035 }
  0xab   : > { %552 = vrot.lane.b32.xlu1 %v546_v33, %s1748_s23 }
  0xac   : > { %554 = vrot.lane.b32.xlu0 %v547_v34, %s1748_s23  ;;  %v545_v34 = vrot.slane %v1817_v9, 7 }
  0xad   : > { %v2095_v22 = vpop.permute.xlu1 %1037 }
  0xae   : > { %v2097_v26 = vpop.permute.xlu0 %1039 }
  0xaf   : > { %556 = vrot.lane.b32.xlu1 %v548_v37, %s1748_s23  ;;  %v565_v37 = vrot.slane %v1833_v15, 5 }
  0xb0   : > { %558 = vrot.lane.b32.xlu0 %v549_v38, %s1748_s23  ;;  %v566_v38 = vrot.slane %v1836_v16, 6 }
  0xb1   : > { %v2104_v28 = vpop.permute.xlu1 %1671 }
  0xb2   : > { %v2106_v33 = vpop.permute.xlu0 %1676  ;;  %v567_v42 = vor.u32 %v566_v38, %v565_v37  ;;  %v677_v38 = vrot.slane %v1833_v15, 7 }
  0xb3   : > { %512 = vrot.lane.b32.xlu1 %v502_v6, %s1747_s22  ;;  %v685_v6 = vrot.slane %v1821_v11, 7 }
  0xb4   : > { %522 = vrot.lane.b32.xlu0 %v507_v27, %s1747_s22 }
  0xb5   : > { %v2109_v21 = vpop.permute.xlu1 %1056  ;;  %v686_v37 = vor.u32 %v685_v6, %v1824_v12  ;;  %v709_v6 = vrot.slane %v1848_v23, 6 }
  0xb6   : > { %v2111_v29 = vpop.permute.xlu0 %1058 }
  0xb7   : > { %550 = vrot.lane.b32.xlu1 %v545_v34, %s1748_s23  ;;  %v684_v34 = vor.u32 %v683_v61, %v1875_v36 }
  0xb8   : > { %582 = vrot.lane.b32.xlu0 %v1975_v46, %s1749_s24 }
  0xb9   : > { %v2116_v39 = vpop.permute.xlu1 %1060 }
  0xba   : > { %v2118_v41 = vpop.permute.xlu0 %1062 }
  0xbb   : > { %584 = vrot.lane.b32.xlu1 %v1979_v49, %s1749_s24  ;;  %v619_v49 = vrot.slane %v1833_v15, 2 }
  0xbc   : > { %586 = vrot.lane.b32.xlu0 %v1984_v56, %s1749_s24  ;;  %v620_v56 = vrot.slane %v1836_v16, 3 }
  0xbd   : > { %v2122_v44 = vpop.permute.xlu1 %1064 }
  0xbe   : > { %v2124_v45 = vpop.permute.xlu0 %1066  ;;  %v621_v57 = vor.u32 %v620_v56, %v619_v49  ;;  %v653_v56 = vrot.slane %v1817_v9, 1 }
  0xbf   : > { %588 = vrot.lane.b32.xlu1 %v1989_v60, %s1749_s24  ;;  %v599_v60 = vrot.slane %v1817_v9, 4 }
  0xc0   : > { %580 = vrot.lane.b32.xlu0 %v567_v42, %s1749_s24 }
  0xc1   : > { %v2127_v46 = vpop.permute.xlu1 %1083 }
  0xc2   : > { %v2129_v47 = vpop.permute.xlu0 %1085 }
  0xc3   : > { %606 = vrot.lane.b32.xlu1 %v1830_v14, %s1750_s25 }
  0xc4   : > { %608 = vrot.lane.b32.xlu0 %v601_v0, %s1750_s25  ;;  %v681_v0 = vrot.slane %v1863_v30, 7 }
  0xc5   : > { %v2136_v48 = vpop.permute.xlu1 %1087 }
  0xc6   : > { %v2138_v53 = vpop.permute.xlu0 %1089  ;;  %v682_v55 = vor.u32 %v681_v0, %v1866_v31  ;;  %v707_v0 = vrot.slane %v1830_v14, 6 }
  0xc7   : > { %610 = vrot.lane.b32.xlu1 %v1848_v23, %s1750_s25 }
  0xc8   : > { %612 = vrot.lane.b32.xlu0 %v603_v50, %s1750_s25 }
  0xc9   : > { %v2146_v63 = vpop.permute.xlu1 %1091 }
  0xca   : > { %v2148_v59 = vpop.permute.xlu0 %1101 }
  0xcb   : > { %2813 = vst [vmem:[#allocation2_spill] sm:$0xff] %v2148_v59  ;;  %604 = vrot.lane.b32.xlu1 %v599_v60, %s1750_s25  ;;  %v678_v60 = vor.u32 %v677_v38, %v1836_v16  ;;  %v730_v38 = vrot.slane %v1854_v25, 5 }
  0xcc   : > { %634 = vrot.lane.b32.xlu0 %v621_v57, %s1742_s13  ;;  %s1617_s13 = sshll.u32 %s2879_s18, 5 }
  0xcd   : > { %v2155_v27 = vpop.permute.xlu1 %1103  ;;  %s332_s16 = scalar_lea.vmem %s2798_s5, %s1617_s13 }
  0xce   : > { %v2157_v50 = vpop.permute.xlu0 %1105 }
  0xcf   : > { %2814 = vst [vmem:[#allocation3_spill] sm:$0xff] %v2157_v50  ;;  %689 = vrot.lane.b32.xlu1 %v680_v19, %s1751_s26  ;;  %v708_v19 = vrot.slane %v1826_v13, 6 }
  0xd0   : > { %691 = vrot.lane.b32.xlu0 %v682_v55, %s1751_s26 }
  0xd1   : > { %v2162_v42 = vpop.permute.xlu1 %1107 }
  0xd2   : > { %2815 = vst [vmem:[#allocation4_spill] sm:$0xff] %v2162_v42  ;;  %v2164_v49 = vpop.permute.xlu0 %1109 }
  0xd3   : > { %2816 = vst [vmem:[#allocation5_spill] sm:$0xff] %v2164_v49  ;;  %693 = vrot.lane.b32.xlu1 %v684_v34, %s1751_s26  ;;  %v710_v34 = vrot.slane %v1815_v7, 6 }
  0xd4   : > { %695 = vrot.lane.b32.xlu0 %v686_v37, %s1751_s26  ;;  %v729_v37 = vrot.slane %v1851_v24, 4 }
  0xd5   : > { %v2168_v54 = vpop.permute.xlu1 %1122 }
  0xd6   : > { %2817 = vst [vmem:[#allocation6_spill] sm:$0xff] %v2168_v54  ;;  %v2170_v57 = vpop.permute.xlu0 %1124  ;;  %v731_v54 = vor.u32 %v730_v38, %v729_v37  ;;  %v727_v37 = vrot.slane %v1836_v16, 5 }
  0xd7   : > { %2818 = vst [vmem:[#allocation7_spill] sm:$0xff] %v2170_v57  ;;  %658 = vrot.lane.b32.xlu1 %v653_v56, %s1743_s14  ;;  %v736_v57 = vrot.slane %v1875_v36, 5 }
  0xd8   : > { %687 = vrot.lane.b32.xlu0 %v678_v60, %s1751_s26 }
  0xd9   : > { %v2175_v61 = vpop.permute.xlu1 %1126 }
  0xda   : > { %2819 = vst [vmem:[#allocation8_spill] sm:$0xff] %v2175_v61  ;;  %v2177_v55 = vpop.permute.xlu0 %1128  ;;  %v706_v61 = vrot.slane %v1817_v9, 6 }
  0xdb   : > { %2820 = vst [vmem:[#allocation9_spill] sm:$0xff] %v2177_v55  ;;  %713 = vrot.lane.b32.xlu1 %v707_v0, %s1752_s27  ;;  %v732_v55 = vrot.slane %v1863_v30, 4  ;;  %v733_v0 = vrot.slane %v1866_v31, 5 }
  0xdc   : > { %715 = vrot.lane.b32.xlu0 %v708_v19, %s1752_s27  ;;  %v735_v19 = vrot.slane %v1872_v35, 4 }
  0xdd   : > { %v2183_v56 = vpop.permute.xlu1 %1130 }
  0xde   : > { %2821 = vst [vmem:[#allocation10_spill] sm:$0xff] %v2183_v56  ;;  %v2185_v60 = vpop.permute.xlu0 %636  ;;  %v734_v56 = vor.u32 %v733_v0, %v732_v55  ;;  %v737_v50 = vor.u32 %v736_v57, %v735_v19  ;;  %v762_v57 = vrot.slane %v1826_v13, 3 }
  0xdf   : > { %2822 = vst [vmem:[#allocation11_spill] sm:$0xff] %v2185_v60  ;;  %717 = vrot.lane.b32.xlu1 %v709_v6, %s1752_s27  ;;  %v738_v6 = vrot.slane %v1821_v11, 4  ;;  %v739_v60 = vrot.slane %v1824_v12, 5 }
  0xe0   : > { %719 = vrot.lane.b32.xlu0 %v710_v34, %s1752_s27  ;;  %v726_v34 = vrot.slane %v1833_v15, 4 }
  0xe1   : > { %v2192_v49 = vpop.permute.xlu1 %638 }
  0xe2   : > { %2823 = vst [vmem:[#allocation12_spill] sm:$0xff] %v2192_v49  ;;  %v2194_v42 = vpop.permute.xlu0 %640  ;;  %v740_v49 = vor.u32 %v739_v60, %v738_v6  ;;  %v784_v60 = vrot.slane %v1854_v25, 2 }
  0xe3   : > { %711 = vrot.lane.b32.xlu1 %v706_v61, %s1752_s27  ;;  %v728_v61 = vor.u32 %v727_v37, %v726_v34  ;;  %v760_v34 = vrot.slane %v1817_v9, 3  ;;  %v786_v37 = vrot.slane %v1863_v30, 1  ;;  %v792_v30 = vrot.slane %v1821_v11, 1 }
  0xe4   : > { %743 = vrot.lane.b32.xlu0 %v731_v54, %s1753_s28  ;;  %v761_v54 = vrot.slane %v1830_v14, 3  ;;  %v1149_v11 = vsel %vm2227_vm7, %v1815_v7, %v2047_v10 }
  0xe5   : > { %v2200_v38 = vpop.permute.xlu1 %642 }
  0xe6   : > { %2824 = vst [vmem:[#allocation13_spill] sm:$0xff] %v2200_v38  ;;  %v2202_v59 = vpop.permute.xlu0 %1140 }
  0xe7   : > { %2825 = vst [vmem:[#allocation14_spill] sm:$0xff] %v2202_v59  ;;  %745 = vrot.lane.b32.xlu1 %v734_v56, %s1753_s28  ;;  %v783_v56 = vrot.slane %v1851_v24, 1  ;;  %v420_v24 = vsel %vm419_vm4, %v2049_v51, %v2055_v52  ;;  %v780_v59 = vrot.slane %v1833_v15, 1  ;;  %v781_v51 = vrot.slane %v1836_v16, 2 }
  0xe8   : > { %747 = vrot.lane.b32.xlu0 %v737_v50, %s1753_s28  ;;  %v763_v50 = vrot.slane %v1848_v23, 3  ;;  %v422_v16 = vsel %vm419_vm4, %v2064_v1, %v2068_v62 }
  0xe9   : > { %v2204_v55 = vpop.permute.xlu1 %660 }
  0xea   : > { %v2206_v0 = vpop.permute.xlu0 %662 }
  0xeb   : > { %749 = vrot.lane.b32.xlu1 %v740_v49, %s1753_s28  ;;  %v764_v49 = vrot.slane %v1815_v7, 3  ;;  %v423_v7 = vsel %vm419_vm4, %v2068_v62, %v2047_v10 }
  0xec   : > { %741 = vrot.lane.b32.xlu0 %v728_v61, %s1753_s28  ;;  %v787_v61 = vrot.slane %v1866_v31, 2  ;;  %v421_v31 = vsel %vm419_vm4, %v2055_v52, %v2064_v1  ;;  %v1164_v1 = vsel %vm821_vm3, %v1149_v11, %v2035_v43  ;;  %vm887_vm4 = vsmask.f32 2304 }
  0xed   : > { %v2210_v19 = vpop.permute.xlu1 %664  ;;  %v2261_v15 = vsel %vm2227_vm7, %v1830_v14, %v421_v31  ;;  %v999_v14 = vsel %vm2810_vm0, %v2041_v20, %v2043_v32  ;;  %v1045_v31 = vsel %vm1041_vm10, %v2095_v22, %v2097_v26 }
  0xee   : > { %v2212_v38 = vpop.permute.xlu0 %666 }
  0xef   : > { %2826 = vst [vmem:[#allocation15_spill] sm:$0xff] %v2212_v38  ;;  %767 = vrot.lane.b32.xlu1 %v761_v54, %s1754_s29  ;;  %v793_v38 = vrot.slane %v1824_v12, 2 }
  0xf0   : > { %769 = vrot.lane.b32.xlu0 %v762_v57, %s1754_s29  ;;  %v789_v57 = vrot.slane %v1872_v35, 1  ;;  %v785_v35 = vor.u32 %v784_v60, %v783_v56  ;;  %v782_v56 = vor.u32 %v781_v51, %v780_v59  ;;  %v1021_v59 = vsel %vm1020_vm8, %v2062_v58, %v2070_v2 }
  0xf1   : > { %v2220_v6 = vpop.permute.xlu1 %1146  ;;  %v2296_v60 = vsel %vm2227_vm7, %v1826_v13, %v422_v16  ;;  %v1679_v13 = vunpack.i.h.bf16 %v2106_v33 }
  0xf2   : > { %2827 = vst [vmem:[#allocation16_spill] sm:$0xff] %v2220_v6  ;;  %v2234_v25 = vpop.permute.xlu0 %435  ;;  %v790_v6 = vrot.slane %v1875_v36, 2  ;;  %v2254_v36 = vsel %vm2227_vm7, %v1817_v9, %v420_v24  ;;  %v788_v9 = vor.u32 %v787_v61, %v786_v37  ;;  %v1673_v37 = vunpack.i.l.bf16 %v2104_v28 }
  0xf3   : > { %771 = vrot.lane.b32.xlu1 %v763_v50, %s1754_s29  ;;  %v1151_v62 = vsel %vm821_vm3, %v2254_v36, %v2041_v20  ;;  %v2301_v20 = vsel %vm2227_vm7, %v1848_v23, %v423_v7  ;;  %v1678_v61 = vunpack.i.l.bf16 %v2106_v33  ;;  %v1001_v23 = vsel %vm2810_vm0, %v2053_v40, %v2035_v43 }
  0xf4   : > { %773 = vrot.lane.b32.xlu0 %v764_v49, %s1754_s29  ;;  %v791_v50 = vor.u32 %v790_v6, %v789_v57  ;;  %v794_v49 = vor.u32 %v793_v38, %v792_v30  ;;  %v1000_v38 = vsel %vm2810_vm0, %v2043_v32, %v2053_v40  ;;  %v1154_v6 = vsel %vm821_vm3, %v2261_v15, %v999_v14  ;;  %vm2356_vm0 = vmand %vm862_vm12, %vm863_vm13 }
  0xf5   : > { %v2256_v12 = vpop.permute.xlu1 %437  ;;  %v1674_v32 = vunpack.i.h.bf16 %v2104_v28  ;;  %v1166_v54 = vsel %vm2279_vm15, %v1151_v62, %v2062_v58  ;;  %v1167_v57 = vsel %vm2279_vm15, %v1154_v6, %v1021_v59  ;;  %v1022_v28 = vsel %vm1020_vm8, %v2070_v2, %v2074_v4  ;;  %vm2421_vm13 = vmand %vm821_vm3, %vm887_vm4 }
  0xf6   : > { %v2269_v52 = vpop.permute.xlu0 %439  ;;  %vm1132_vm7 = vcmask 531456   ;;  %v1157_v33 = vsel %vm821_vm3, %v2296_v60, %v1000_v38  ;;  %v1023_v43 = vsel %vm1020_vm8, %v2074_v4, %v2076_v8  ;;  %v1160_v40 = vsel %vm821_vm3, %v2301_v20, %v1001_v23 }
  0xf7   : > { %765 = vrot.lane.b32.xlu1 %v760_v34, %s1754_s29  ;;  %v1024_v58 = vsel %vm1020_vm8, %v2076_v8, %v2080_v3  ;;  %v1042_v2 = vsel %vm1041_vm10, %v2082_v17, %v2086_v18  ;;  %v1043_v30 = vsel %vm1041_vm10, %v2086_v18, %v2088_v5  ;;  %v1044_v4 = vsel %vm1041_vm10, %v2088_v5, %v2095_v22 }
  0xf8   : > { %797 = vrot.lane.b32.xlu0 %v785_v35, %s1755_s30  ;;  %vm893_vm8 = vcmask 1043456   ;;  %v1168_v3 = vsel %vm2279_vm15, %v1157_v33, %v1022_v28  ;;  %v1069_v5 = vsel %vm1068_vm11, %v1673_v37, %v1674_v32  ;;  %v1070_v22 = vsel %vm1068_vm11, %v1674_v32, %v1678_v61  ;;  %v2839_v28 = vld [vmem:[#allocation5_spill] sm:$0xff] }
  0xf9   : > { %v2305_v34 = vpop.permute.xlu1 %441  ;;  %v1071_v26 = vsel %vm1068_vm11, %v1678_v61, %v1679_v13  ;;  %v1169_v35 = vsel %vm2279_vm15, %v1160_v40, %v1023_v43  ;;  %v1170_v11 = vsel %vm2279_vm15, %v1164_v1, %v1024_v58  ;;  %v1173_v16 = vsel %vm845_vm9, %v1166_v54, %v2082_v17  ;;  %v2840_v58 = vld [vmem:[#allocation7_spill] sm:$0xff] }
  0xfa   : > { %v2311_v24 = vpop.permute.xlu0 %433  ;;  %v1072_v7 = vsel %vm1068_vm11, %v1679_v13, %v2109_v21  ;;  %v1181_v14 = vsel %vm845_vm9, %v1168_v3, %v1043_v30  ;;  %v1185_v62 = vsel %vm845_vm9, %v1169_v35, %v1044_v4  ;;  %v1073_v1 = vsel %vm1068_vm11, %v2111_v29, %v2116_v39  ;;  %v2842_v4 = vld [vmem:[#allocation8_spill] sm:$0xff] }
  0xfb   : > { %799 = vrot.lane.b32.xlu1 %v788_v9, %s1755_s30  ;;  %v1189_v9 = vsel %vm845_vm9, %v1170_v11, %v1045_v31  ;;  %v1193_v21 = vsel %vm2356_vm0, %v1181_v14, %v1070_v22  ;;  %v1094_v38 = vsel %vm1093_vm14, %v2127_v46, %v2129_v47  ;;  %v1095_v6 = vsel %vm1093_vm14, %v2129_v47, %v2136_v48  ;;  %v2843_v35 = vld [vmem:[#allocation12_spill] sm:$0xff]  ;;  %v2844_v11 = vld [vmem:[#allocation11_spill] sm:$0xff] }
  0xfc   : > { %801 = vrot.lane.b32.xlu0 %v791_v50, %s1755_s30  ;;  %v1177_v50 = vsel %vm845_vm9, %v1167_v57, %v1042_v2  ;;  %vm443_vm10 = vcmask 1031168   ;;  %v1195_v13 = vsel %vm2356_vm0, %v1189_v9, %v1072_v7  ;;  %vm917_vm12 = vcmask 1046528   ;;  %v2841_v2 = vld [vmem:[#allocation6_spill] sm:$0xff] }
  0xfd   : > { %v2348_v8 = vpop.permute.xlu1 %465  ;;  %v1192_v17 = vsel %vm2356_vm0, %v1177_v50, %v1069_v5  ;;  %v1075_v61 = vsel %vm1068_vm11, %v2118_v41, %v2122_v44  ;;  %v1096_v23 = vsel %vm1093_vm14, %v2136_v48, %v2138_v53  ;;  %v1097_v47 = vsel %vm1093_vm14, %v2138_v53, %v2146_v63  ;;  %v2836_v48 = vld [vmem:[#allocation2_spill] sm:$0xff]  ;;  %v2837_v63 = vld [vmem:[#allocation3_spill] sm:$0xff]  ;;  %vm2484_vm14 = vmand %vm845_vm9, %vm911_vm1 }
  0xfe   : > { %v2352_v51 = vpop.permute.xlu0 %467  ;;  %v1076_v54 = vsel %vm1068_vm11, %v2122_v44, %v2124_v45  ;;  %v1112_v53 = vsel %vm1111_vm6, %v2836_v48, %v2155_v27  ;;  %v1113_v57 = vsel %vm1111_vm6, %v2155_v27, %v2837_v63  ;;  %v1202_v44 = vsel %vm869_vm2, %v1073_v1, %v1094_v38  ;;  %v2838_v45 = vld [vmem:[#allocation4_spill] sm:$0xff] }
  0xff   : > { %803 = vrot.lane.b32.xlu1 %v794_v49, %s1755_s30  ;;  %v1194_v49 = vsel %vm2356_vm0, %v1185_v62, %v1071_v26  ;;  %v1115_v33 = vsel %vm1111_vm6, %v2838_v45, %v2839_v28  ;;  %v1210_v40 = vsel %vm869_vm2, %v1075_v61, %v1096_v23  ;;  %v1214_v27 = vsel %vm869_vm2, %v1076_v54, %v1097_v47  ;;  %v2851_v54 = vld [vmem:[#allocation13_spill] sm:$0xff] }
 0x100   : > { %795 = vrot.lane.b32.xlu0 %v782_v56, %s1755_s30  ;;  %v1191_v56 = vsel %vm2356_vm0, %v1173_v16, %v1673_v37  ;;  %v1074_v37 = vsel %vm1068_vm11, %v2116_v39, %v2118_v41  ;;  %v1198_v39 = vsel %vm869_vm2, %v2111_v29, %v2127_v46  ;;  %v1114_v46 = vsel %vm1111_vm6, %v2837_v63, %v2838_v45  ;;  %v2856_v45 = vld [vmem:[#allocation16_spill] sm:$0xff] }
 0x101   : > { %v2377_v59 = vpop.permute.xlu1 %469  ;;  %v1206_v29 = vsel %vm869_vm2, %v1074_v37, %v1095_v6  ;;  %v1133_v30 = vsel %vm1132_vm7, %v2841_v2, %v2840_v58  ;;  %v1134_v31 = vsel %vm1132_vm7, %v2840_v58, %v2842_v4  ;;  %v1216_v5 = vsel %vm2421_vm13, %v1198_v39, %v2836_v48  ;;  %v2849_v6 = vld [vmem:[#allocation10_spill] sm:$0xff] }
 0x102   : > { %v2396_v32 = vpop.permute.xlu0 %471  ;;  %v1217_v22 = vsel %vm2421_vm13, %v1202_v44, %v1112_v53  ;;  %v1218_v26 = vsel %vm2421_vm13, %v1206_v29, %v1113_v57  ;;  %vm2845_vm11 = vcmask 523264   ;;  %v1219_v7 = vsel %vm2421_vm13, %v1210_v40, %v1114_v46  ;;  %v2853_v57 = vld [vmem:[#allocation14_spill] sm:$0xff]  ;;  %v2855_v44 = vld [vmem:[#allocation15_spill] sm:$0xff] }
 0x103   : > { %1270 = vrot.lane.b32.xlu1 %v1192_v17, %s1756_s6  ;;  %v2462_v16 = vsel %vm2845_vm11, %v2844_v11, %v2843_v35  ;;  %v1220_v9 = vsel %vm2421_vm13, %v1214_v27, %v1115_v33  ;;  %v1223_v50 = vsel %vm893_vm8, %v1216_v5, %v2841_v2  ;;  %v2474_v14 = vsel %vm668_vm5, %v2204_v55, %v2206_v0  ;;  %vm2850_vm4 = vmmov %vm2845_vm11 }
 0x104   : > { %1272 = vrot.lane.b32.xlu0 %v1193_v21, %s1756_s6  ;;  %v1227_v62 = vsel %vm893_vm8, %v1217_v22, %v1133_v30  ;;  %v1231_v17 = vsel %vm893_vm8, %v1218_v26, %v1134_v31  ;;  %v2846_v21 = vld [vmem:[#allocation9_spill] sm:$0xff]  ;;  %v2497_v61 = vsel %vm2850_vm4, %v2843_v35, %v2194_v42  ;;  %vm473_vm6 = vcmask 982016   ;;  %vm2852_vm1 = vmmov %vm2850_vm4 }
 0x105   : > { %v2440_v43 = vpop.permute.xlu1 %463  ;;  %v1136_v37 = vsel %vm1132_vm7, %v2846_v21, %v2849_v6  ;;  %v1757_v47 = vmov 0   ;;  %v2504_v39 = vsel %vm2852_vm1, %v2194_v42, %v2851_v54  ;;  %v2509_v48 = vsel %vm668_vm5, %v2206_v0, %v2210_v19  ;;  %vm2854_vm11 = vmmov %vm2852_vm1 }
 0x106   : > { %v2450_v3 = vpop.permute.xlu0 %489  ;;  %1417 = vmatprep.mubr.bf16.mxu1 %v1757_v47  ;;  %1376 = vmatprep.mubr.bf16.mxu0 %v1757_v47  ;;  %v1142_v42 = vsel %vm2854_vm11, %v2851_v54, %v2853_v57  ;;  %v2522_v29 = vsel %vm668_vm5, %v2210_v19, %v2855_v44  ;;  %vm532_vm4 = vcmask 965632   ;;  %v1239_v0 = vsel %vm893_vm8, %v1220_v9, %v1136_v37 }
 0x107   : > { %1274 = vrot.lane.b32.xlu1 %v1194_v49, %s1756_s6  ;;  %v1135_v49 = vsel %vm1132_vm7, %v2842_v4, %v2846_v21  ;;  %vm497_vm7 = vcmask 973824   ;;  %1690 = vset.pattern.permute.xlu0 %v1757_v47  ;;  %v1148_v46 = vsel %vm668_vm5, %v2855_v44, %v2856_v45  ;;  %v445_v19 = vsel %vm443_vm10, %v2234_v25, %v2256_v12 }
 0x108   : > { %1276 = vrot.lane.b32.xlu0 %v1195_v13, %s1756_s6  ;;  %v1242_v13 = vsel %vm2484_vm14, %v1227_v62, %v2462_v16  ;;  %v1235_v63 = vsel %vm893_vm8, %v1219_v7, %v1135_v49  ;;  %1691 = vset.pattern.permute.xlu1 %v1757_v47  ;;  %v1241_v33 = vsel %vm2484_vm14, %v1223_v50, %v2844_v11  ;;  %vm983_vm11 = vsmask.f32 6400 }
 0x109   : > { %v492_v38 = vpop.permute.xlu1 %491  ;;  %v1250_v53 = vsel %vm917_vm12, %v1242_v13, %v2474_v14  ;;  %v1244_v40 = vsel %vm2484_vm14, %v1235_v63, %v2504_v39  ;;  %v446_v27 = vsel %vm443_vm10, %v2256_v12, %v2269_v52  ;;  %v1245_v30 = vsel %vm2484_vm14, %v1239_v0, %v1142_v42 }
 0x10a   : > { %v494_v23 = vpop.permute.xlu0 %493  ;;  %v447_v4 = vsel %vm443_vm10, %v2269_v52, %v2305_v34  ;;  %v1254_v31 = vsel %vm917_vm12, %v1244_v40, %v2522_v29  ;;  %v1248_v5 = vsel %vm917_vm12, %v1241_v33, %v2204_v55  ;;  %v828_v12 = vsel %vm821_vm3, %v2261_v15, %v445_v19  ;;  %v1320_v19 = vld [vmem:[%s2796_s3] sm:$0xff] }
 0x10b   : > { %1268 = vrot.lane.b32.xlu1 %v1191_v56, %s1756_s6  ;;  %v1243_v56 = vsel %vm2484_vm14, %v1231_v17, %v2497_v61  ;;  %v475_v22 = vsel %vm473_vm6, %v2348_v8, %v2352_v51  ;;  %v476_v26 = vsel %vm473_vm6, %v2352_v51, %v2377_v59  ;;  %v1257_v52 = vsel %vm917_vm12, %v1245_v30, %v1148_v46  ;;  %v1482_v33 = vld [vmem:[%s2797_s4] sm:$0xff] }
 0x10c   : > { %1280 = vrot.lane.b32.xlu0 %v1250_v53, %s1756_s6  ;;  %v1252_v2 = vsel %vm917_vm12, %v1243_v56, %v2509_v48  ;;  %v832_v34 = vsel %vm821_vm3, %v2296_v60, %v446_v27  ;;  %v477_v35 = vsel %vm473_vm6, %v2377_v59, %v2396_v32  ;;  %v499_v15 = vsel %vm497_vm7, %v2450_v3, %v492_v38 }
 0x10d   : > { %v496_v28 = vpop.permute.xlu1 %495  ;;  %v500_v7 = vsel %vm497_vm7, %v492_v38, %v494_v23  ;;  %v836_v51 = vsel %vm821_vm3, %v2301_v20, %v447_v4  ;;  %v842_v60 = vsel %vm2279_vm15, %v828_v12, %v475_v22  ;;  %v843_v59 = vsel %vm2279_vm15, %v832_v34, %v476_v26 }
 0x10e   : > { %v488_v58 = vpop.permute.xlu0 %487  ;;  %v501_v50 = vsel %vm497_vm7, %v494_v23, %v496_v28  ;;  %v844_v38 = vsel %vm2279_vm15, %v836_v51, %v477_v35  ;;  %v852_v6 = vsel %vm845_vm9, %v842_v60, %v499_v15  ;;  %v856_v37 = vsel %vm845_vm9, %v843_v59, %v500_v7 }
 0x10f   : > { %1282 = vrot.lane.b32.xlu1 %v1252_v2, %s1756_s6  ;;  %v860_v53 = vsel %vm845_vm9, %v844_v38, %v501_v50  ;;  %v444_v40 = vsel %vm443_vm10, %v2311_v24, %v2234_v25  ;;  %v498_v30 = vsel %vm497_vm7, %v488_v58, %v2450_v3  ;;  %vm560_vm10 = vcmask 916480  }
 0x110   : > { %1284 = vrot.lane.b32.xlu0 %v1254_v31, %s1756_s6  ;;  %v824_v4 = vsel %vm821_vm3, %v2254_v36, %v444_v40  ;;  %vm614_vm3 = vcmask 900096   ;;  %vm775_vm7 = vcmask 441344  }
 0x111   : > { %v1682_v9 = vpop.permute.xlu1 %1681 }
 0x112   : > { %v1684_v62 = vunpack.i.h.bf16 %v1682_v9  ;;  %v1683_v17 = vunpack.i.l.bf16 %v1682_v9  ;;  %v1687_v21 = vpop.permute.xlu0 %1686 }
 0x113   : > { %v1689_v32 = vunpack.i.h.bf16 %v1687_v21  ;;  %v1688_v49 = vunpack.i.l.bf16 %v1687_v21  ;;  %1286 = vrot.lane.b32.xlu1 %v1257_v52, %s1756_s6 }
 0x114   : > { %1278 = vrot.lane.b32.xlu0 %v1248_v5, %s1756_s6  ;;  %v534_v20 = vsel %vm532_vm4, %v1683_v17, %v1684_v62 }
 0x115   : > { %v2589_v13 = vpop.permute.xlu1 %524  ;;  %v866_v23 = vsel %vm2356_vm0, %v852_v6, %v534_v20  ;;  %v536_v54 = vsel %vm532_vm4, %v1688_v49, %v1689_v32  ;;  %v535_v63 = vsel %vm532_vm4, %v1684_v62, %v1688_v49 }
 0x116   : > { %v527_v57 = vpop.permute.xlu0 %526  ;;  %1344 = vmatprep.subr.bf16.mxu0 %v866_v23  ;;  %v868_v42 = vsel %vm2356_vm0, %v860_v53, %v536_v54  ;;  %v867_v44 = vsel %vm2356_vm0, %v856_v37, %v535_v63 }
 0x117   : > { %1385 = vmatprep.subr.bf16.mxu1 %v868_v42  ;;  %1290 = vrot.lane.b32.xlu1 %v2474_v14, %s1756_s6  ;;  %v538_v34 = vsel %vm532_vm4, %v2589_v13, %v527_v57 }
 0x118   : > { %1386 = vmatpush1.bf16.msra.mxu1 %v867_v44  ;;  %1292 = vrot.lane.b32.xlu0 %v2509_v48, %s1756_s6 }
 0x119   : > { %v529_v0 = vpop.permute.xlu1 %528 }
 0x11a   : > { %v531_v56 = vpop.permute.xlu0 %530 }
 0x11b   : > { %1294 = vrot.lane.b32.xlu1 %v2522_v29, %s1756_s6  ;;  %v540_v21 = vsel %vm532_vm4, %v529_v0, %v531_v56 }
 0x11c   : > { %1296 = vrot.lane.b32.xlu0 %v1148_v46, %s1756_s6  ;;  %v474_v46 = vsel %vm473_vm6, %v2440_v43, %v2348_v8  ;;  %vm590_vm6 = vcmask 908288  }
 0x11d   : > { %v553_v45 = vpop.permute.xlu1 %552  ;;  %v841_v31 = vsel %vm2279_vm15, %v824_v4, %v474_v46  ;;  %vm721_vm15 = vcmask 457728  }
 0x11e   : > { %v555_v28 = vpop.permute.xlu0 %554  ;;  %v848_v24 = vsel %vm845_vm9, %v841_v31, %v498_v30  ;;  %vm697_vm9 = vcmask 506880  }
 0x11f   : > { %1288 = vrot.lane.b32.xlu1 %v2204_v55, %s1756_s6  ;;  %v562_v10 = vsel %vm560_vm10, %v553_v45, %v555_v28 }
 0x120   : > { %1323 = vperm.xlu0 %1690, %v1320_v19   ;;  %v876_v18 = vsel %vm869_vm2, %v538_v34, %v562_v10 }
 0x121   : > { %v557_v27 = vpop.permute.xlu1 %556 }
 0x122   : > { %v559_v2 = vpop.permute.xlu0 %558  ;;  %v563_v15 = vsel %vm560_vm10, %v555_v28, %v557_v27 }
 0x123   : > { %1485 = vperm.xlu1 %1691, %v1482_v33   ;;  %v564_v7 = vsel %vm560_vm10, %v557_v27, %v559_v2 }
 0x124   : > { %v884_v49 = vsel %vm869_vm2, %v540_v21, %v564_v7 }
 0x125   : > { %v513_v5 = vpop.permute.xlu1 %512 }
 0x126   : > { %v533_v12 = vsel %vm532_vm4, %v513_v5, %v1683_v17  ;;  %v523_v25 = vpop.permute.xlu0 %522  ;;  %v539_v17 = vsel %vm532_vm4, %v527_v57, %v529_v0 }
 0x127   : > { %v865_v8 = vsel %vm2356_vm0, %v848_v24, %v533_v12  ;;  %v880_v32 = vsel %vm869_vm2, %v539_v17, %v563_v15  ;;  %v537_v44 = vsel %vm532_vm4, %v523_v25, %v2589_v13  ;;  %vm2857_vm0 = vmmov %vm2852_vm1 }
 0x128   : > { %1345 = vmatpush1.bf16.msra.mxu0 %v865_v8 }
 0x129   : > { %v551_v43 = vpop.permute.xlu1 %550 }
 0x12a   : > { %v583_v22 = vpop.permute.xlu0 %582  ;;  %v561_v6 = vsel %vm560_vm10, %v551_v43, %v553_v45  ;;  %vm805_vm10 = vcmask 392192  }
 0x12b   : > { %v872_v45 = vsel %vm869_vm2, %v537_v44, %v561_v6 }
 0x12d   : > { %v585_v3 = vpop.permute.xlu1 %584 }
 0x12e   : > { %v587_v58 = vpop.permute.xlu0 %586  ;;  %v592_v52 = vsel %vm590_vm6, %v583_v22, %v585_v3 }
 0x12f   : > { %v890_v51 = vsel %vm2421_vm13, %v876_v18, %v592_v52  ;;  %v593_v50 = vsel %vm590_vm6, %v585_v3, %v587_v58 }
 0x130   : > { %v891_v37 = vsel %vm2421_vm13, %v880_v32, %v593_v50 }
 0x131   : > { %v589_v36 = vpop.permute.xlu1 %588 }
 0x132   : > { %v581_v26 = vpop.permute.xlu0 %580  ;;  %v594_v60 = vsel %vm590_vm6, %v587_v58, %v589_v36 }
 0x133   : > { %v892_v63 = vsel %vm2421_vm13, %v884_v49, %v594_v60  ;;  %v591_v57 = vsel %vm590_vm6, %v581_v26, %v583_v22  ;;  %vm2717_vm6 = vmand %vm917_vm12, %vm983_vm11 }
 0x134   : > { %v889_v33 = vsel %vm2421_vm13, %v872_v45, %v591_v57  ;;  %vm751_vm13 = vcmask 449536  }
 0x135   : > { %v607_v35 = vpop.permute.xlu1 %606 }
 0x136   : > { %v609_v9 = vpop.permute.xlu0 %608 }
 0x137   : > { %v616_v62 = vsel %vm614_vm3, %v607_v35, %v609_v9 }
 0x138   : > { %v900_v59 = vsel %vm893_vm8, %v890_v51, %v616_v62 }
 0x139   : > { %v611_v38 = vpop.permute.xlu1 %610  ;;  %v914_v20 = vsel %vm2484_vm14, %v900_v59, %v2462_v16 }
 0x13a   : > { %v617_v23 = vsel %vm614_vm3, %v609_v9, %v611_v38  ;;  %v613_v54 = vpop.permute.xlu0 %612  ;;  %v924_v53 = vsel %vm917_vm12, %v914_v20, %v2474_v14 }
 0x13b   : > { %v904_v42 = vsel %vm893_vm8, %v891_v37, %v617_v23  ;;  %v618_v16 = vsel %vm614_vm3, %v611_v38, %v613_v54  ;;  %1346 = vmatprep.subr.bf16.mxu0 %v924_v53 }
 0x13c   : > { %v908_v0 = vsel %vm893_vm8, %v892_v63, %v618_v16  ;;  %v915_v56 = vsel %vm2484_vm14, %v904_v42, %v2497_v61 }
 0x13d   : > { %v605_v19 = vpop.permute.xlu1 %604  ;;  %v916_v28 = vsel %vm2484_vm14, %v908_v0, %v2504_v39  ;;  %v928_v2 = vsel %vm917_vm12, %v915_v56, %v2509_v48 }
 0x13e   : > { %v615_v40 = vsel %vm614_vm3, %v605_v19, %v607_v35  ;;  %v635_v27 = vpop.permute.xlu0 %634  ;;  %v932_v13 = vsel %vm917_vm12, %v916_v28, %v2522_v29 }
 0x13f   : > { %v896_v46 = vsel %vm893_vm8, %v889_v33, %v615_v40  ;;  %v645_v61 = vsel %vm2857_vm0, %v635_v27, %v2844_v11  ;;  %1387 = vmatprep.subr.bf16.mxu1 %v932_v13 }
 0x140   : > { %1388 = vmatpush1.bf16.msra.mxu1 %v928_v2  ;;  %v913_v41 = vsel %vm2484_vm14, %v896_v46, %v645_v61  ;;  %vm959_vm14 = vsmask.f32 3328 }
 0x141   : > { %v690_v39 = vpop.permute.xlu1 %689  ;;  %vm2700_vm4 = vmand %vm893_vm8, %vm959_vm14  ;;  %vm2862_vm8 = vcmask 1041408   ;;  %vm1298_vm14 = vcmask 384000  }
 0x142   : > { %v692_v30 = vpop.permute.xlu0 %691  ;;  %vm2866_vm3 = vmmov %vm2862_vm8 }
 0x143   : > { %v699_v15 = vsel %vm697_vm9, %v690_v39, %v692_v30  ;;  %vm2867_vm0 = vmmov %vm2866_vm3 }
 0x145   : > { %v694_v4 = vpop.permute.xlu1 %693 }
 0x146   : > { %v696_v31 = vpop.permute.xlu0 %695  ;;  %v700_v7 = vsel %vm697_vm9, %v692_v30, %v694_v4 }
 0x147   : > { %v701_v9 = vsel %vm697_vm9, %v694_v4, %v696_v31 }
 0x149   : > { %v659_v5 = vpop.permute.xlu1 %658 }
 0x14a   : > { %v2686_v12 = vsel %vm668_vm5, %v659_v5, %v2204_v55  ;;  %v688_v25 = vpop.permute.xlu0 %687  ;;  %vm935_vm5 = vsmask.f32 256 }
 0x14b   : > { %v920_v11 = vsel %vm917_vm12, %v913_v41, %v2686_v12  ;;  %vm2691_vm1 = vmand %vm869_vm2, %vm935_vm5  ;;  %vm2865_vm12 = vcmask 1044480  }
 0x14c   : > { %1347 = vmatpush1.bf16.msra.mxu0 %v920_v11  ;;  %v938_v60 = vsel %vm2691_vm1, %v2474_v14, %v699_v15  ;;  %v939_v32 = vsel %vm2691_vm1, %v2509_v48, %v700_v7  ;;  %v940_v49 = vsel %vm2691_vm1, %v2522_v29, %v701_v9  ;;  %v698_v14 = vsel %vm697_vm9, %v688_v25, %v690_v39  ;;  %vm2868_vm9 = vmmov %vm2867_vm0 }
 0x14d   : > { %v714_v24 = vpop.permute.xlu1 %713  ;;  %v937_v56 = vsel %vm2691_vm1, %v2686_v12, %v698_v14  ;;  %vm2869_vm5 = vmmov %vm2865_vm12 }
 0x14e   : > { %v716_v8 = vpop.permute.xlu0 %715 }
 0x14f   : > { %v723_v51 = vsel %vm721_vm15, %v714_v24, %v716_v8 }
 0x150   : > { %v948_v38 = vsel %vm2862_vm8, %v938_v60, %v723_v51 }
 0x151   : > { %v718_v43 = vpop.permute.xlu1 %717 }
 0x152   : > { %v720_v22 = vpop.permute.xlu0 %719  ;;  %v724_v6 = vsel %vm721_vm15, %v716_v8, %v718_v43 }
 0x153   : > { %v725_v37 = vsel %vm721_vm15, %v718_v43, %v720_v22  ;;  %v952_v33 = vsel %vm2867_vm0, %v939_v32, %v724_v6 }
 0x154   : > { %v956_v45 = vsel %vm2866_vm3, %v940_v49, %v725_v37 }
 0x155   : > { %v712_v1 = vpop.permute.xlu1 %711 }
 0x156   : > { %v744_v3 = vpop.permute.xlu0 %743  ;;  %v722_v54 = vsel %vm721_vm15, %v712_v1, %v714_v24  ;;  %vm2870_vm15 = vmmov %vm2869_vm5 }
 0x157   : > { %v944_v40 = vsel %vm2868_vm9, %v937_v56, %v722_v54 }
 0x159   : > { %v746_v58 = vpop.permute.xlu1 %745 }
 0x15a   : > { %v748_v36 = vpop.permute.xlu0 %747  ;;  %v753_v17 = vsel %vm751_vm13, %v744_v3, %v746_v58 }
 0x15b   : > { %v962_v48 = vsel %vm2700_vm4, %v948_v38, %v753_v17  ;;  %v754_v42 = vsel %vm751_vm13, %v746_v58, %v748_v36 }
 0x15c   : > { %v963_v61 = vsel %vm2700_vm4, %v952_v33, %v754_v42 }
 0x15d   : > { %v750_v26 = vpop.permute.xlu1 %749 }
 0x15e   : > { %v742_v10 = vpop.permute.xlu0 %741  ;;  %v755_v29 = vsel %vm751_vm13, %v748_v36, %v750_v26 }
 0x15f   : > { %v752_v16 = vsel %vm751_vm13, %v742_v10, %v744_v3  ;;  %v964_v27 = vsel %vm2700_vm4, %v956_v45, %v755_v29  ;;  %vm2871_vm13 = vmmov %vm2869_vm5 }
 0x160   : > { %v961_v2 = vsel %vm2700_vm4, %v944_v40, %v752_v16 }
 0x161   : > { %v768_v52 = vpop.permute.xlu1 %767 }
 0x162   : > { %v770_v34 = vpop.permute.xlu0 %769 }
 0x163   : > { %v777_v59 = vsel %vm775_vm7, %v768_v52, %v770_v34 }
 0x164   : > { %v972_v57 = vsel %vm2865_vm12, %v962_v48, %v777_v59 }
 0x165   : > { %v772_v55 = vpop.permute.xlu1 %771 }
 0x166   : > { %v774_v35 = vpop.permute.xlu0 %773  ;;  %v778_v19 = vsel %vm775_vm7, %v770_v34, %v772_v55 }
 0x167   : > { %v779_v44 = vsel %vm775_vm7, %v772_v55, %v774_v35  ;;  %v976_v12 = vsel %vm2871_vm13, %v963_v61, %v778_v19 }
 0x168   : > { %v980_v30 = vsel %vm2869_vm5, %v964_v27, %v779_v44 }
 0x169   : > { %v766_v50 = vpop.permute.xlu1 %765 }
 0x16a   : > { %v798_v21 = vpop.permute.xlu0 %797  ;;  %v776_v28 = vsel %vm775_vm7, %v766_v50, %v768_v52  ;;  %v1331_v50 = vsel %vm869_vm2, 65535, %v1757_v47  ;;  %v1319_v47 = vld [vmem:[%s2795_s2] sm:$0xf]  ;;  %vm2872_vm2 = vcmask 662528  }
 0x16b   : > { %v968_v5 = vsel %vm2870_vm15, %v961_v2, %v776_v28  ;;  %vm2873_vm1 = vmmov %vm2872_vm2 }
 0x16d   : > { %v800_v23 = vpop.permute.xlu1 %799 }
 0x16e   : > { %v807_v53 = vsel %vm805_vm10, %v798_v21, %v800_v23  ;;  %v802_v63 = vpop.permute.xlu0 %801 }
 0x16f   : > { %v986_v0 = vsel %vm2717_vm6, %v972_v57, %v807_v53  ;;  %v808_v13 = vsel %vm805_vm10, %v800_v23, %v802_v63 }
 0x170   : > { %1348 = vmatprep.subr.bf16.mxu0 %v986_v0  ;;  %v987_v11 = vsel %vm2717_vm6, %v976_v12, %v808_v13 }
 0x171   : > { %v804_v46 = vpop.permute.xlu1 %803 }
 0x172   : > { %v809_v41 = vsel %vm805_vm10, %v802_v63, %v804_v46  ;;  %v796_v39 = vpop.permute.xlu0 %795 }
 0x173   : > { %v806_v4 = vsel %vm805_vm10, %v796_v39, %v798_v21  ;;  %v988_v31 = vsel %vm2717_vm6, %v980_v30, %v809_v41 }
 0x174   : > { %1389 = vmatprep.subr.bf16.mxu1 %v988_v31  ;;  %v985_v25 = vsel %vm2717_vm6, %v968_v5, %v806_v4 }
 0x175   : > { %1349 = vmatpush1.bf16.msra.mxu0 %v985_v25  ;;  %1390 = vmatpush1.bf16.msra.mxu1 %v987_v11  ;;  %v1271_v24 = vpop.permute.xlu1 %1270 }
 0x176   : > { %v1273_v8 = vpop.permute.xlu0 %1272 }
 0x177   : > { %v1300_v43 = vsel %vm1298_vm14, %v1271_v24, %v1273_v8 }
 0x178   : > { %1350 = vmatprep.subr.bf16.mxu0 %v1300_v43 }
 0x179   : > { %v1275_v22 = vpop.permute.xlu1 %1274 }
 0x17a   : > { %v1277_v1 = vpop.permute.xlu0 %1276  ;;  %v1301_v58 = vsel %vm1298_vm14, %v1273_v8, %v1275_v22 }
 0x17b   : > { %v1302_v3 = vsel %vm1298_vm14, %v1275_v22, %v1277_v1 }
 0x17c   : > { %1391 = vmatprep.subr.bf16.mxu1 %v1302_v3 }
 0x17d   : > { %1392 = vmatpush1.bf16.msra.mxu1 %v1301_v58  ;;  %v1269_v36 = vpop.permute.xlu1 %1268 }
 0x17e   : > { %v1281_v26 = vpop.permute.xlu0 %1280  ;;  %v1299_v10 = vsel %vm1298_vm14, %v1269_v36, %v1271_v24 }
 0x17f   : > { %1351 = vmatpush1.bf16.msra.mxu0 %v1299_v10 }
 0x181   : > { %v1283_v52 = vpop.permute.xlu1 %1282 }
 0x182   : > { %v1285_v34 = vpop.permute.xlu0 %1284  ;;  %v1304_v55 = vsel %vm1298_vm14, %v1281_v26, %v1283_v52 }
 0x183   : > { %1352 = vmatprep.subr.bf16.mxu0 %v1304_v55  ;;  %v1305_v9 = vsel %vm1298_vm14, %v1283_v52, %v1285_v34 }
 0x185   : > { %v1287_v35 = vpop.permute.xlu1 %1286 }
 0x186   : > { %v1279_v18 = vpop.permute.xlu0 %1278  ;;  %v1306_v15 = vsel %vm1298_vm14, %v1285_v34, %v1287_v35 }
 0x187   : > { %1393 = vmatprep.subr.bf16.mxu1 %v1306_v15  ;;  %v1303_v7 = vsel %vm1298_vm14, %v1279_v18, %v1281_v26 }
 0x188   : > { %1353 = vmatpush1.bf16.msra.mxu0 %v1303_v7  ;;  %1394 = vmatpush1.bf16.msra.mxu1 %v1305_v9 }
 0x189   : > { %v1291_v51 = vpop.permute.xlu1 %1290 }
 0x18a   : > { %v1293_v62 = vpop.permute.xlu0 %1292 }
 0x18b   : > { %v1308_v17 = vsel %vm1298_vm14, %v1291_v51, %v1293_v62 }
 0x18c   : > { %v1336_v21 = vand.u32 %v1331_v50, %v1308_v17 }
 0x18d   : > { %v1295_v60 = vpop.permute.xlu1 %1294 }
 0x18e   : > { %v1309_v59 = vsel %vm1298_vm14, %v1293_v62, %v1295_v60  ;;  %v1297_v32 = vpop.permute.xlu0 %1296  ;;  %1354 = vmatprep.subr.bf16.mxu0 %v1336_v21 }
 0x18f   : > { %v1310_v49 = vsel %vm1298_vm14, %v1295_v60, %v1297_v32  ;;  %v1339_v20 = vand.u32 %v1331_v50, %v1309_v59 }
 0x190   : > { %v1342_v38 = vand.u32 %v1331_v50, %v1310_v49 }
 0x191   : > { %v1289_v14 = vpop.permute.xlu1 %1288 }
 0x192   : > { %v1307_v6 = vsel %vm1298_vm14, %v1289_v14, %v1291_v51  ;;  %1395 = vmatprep.subr.bf16.mxu1 %v1342_v38 }
 0x193   : > { %v1333_v37 = vand.u32 %v1331_v50, %v1307_v6  ;;  %1396 = vmatpush1.bf16.msra.mxu1 %v1339_v20 }
 0x195   : > { %1355 = vmatpush1.bf16.msra.mxu0 %v1333_v37 }
 0x196   : > { %1612 = vmatmul.mubr.msk.bf16.vlgmr.msra.gmra.mrb[0].mxu1 %vm2872_vm2, %v1319_v47 }
 0x198   : > { %1611 = vmatmul.mubr.msk.bf16.vlgmr.msra.gmra.mrb[0].mxu0 %vm2873_vm1, %v1319_v47 }
 0x19f   : > { %v1324_v48 = vpop.permute.xlu0 %1323 }
 0x1a2   : > { %v1486_v37 = vpop.permute.xlu1 %1485 }
 0x269   : > { %v1419_v23 = vpop.f32.mrb[0].mxu1 }
 0x26a   : > { %v1420_v54 = vadd.f32 %v1419_v23, %v1324_v48  ;;  %v1421_v29 = vpop.f32.mrb[1].mxu1 }
 0x26b   : > { %v1422_v53 = vadd.f32 %v1421_v29, %v1324_v48  ;;  %v1378_v63 = vpop.f32.mrb[0].mxu0  ;;  %v1423_v57 = vpop.f32.mrb[2].mxu1 }
 0x26c   : > { %v1428_v42 = vmax.f32 %v1420_v54, 0.0  ;;  %v1379_v16 = vadd.f32 %v1378_v63, %v1324_v48  ;;  %v1380_v44 = vpop.f32.mrb[1].mxu0  ;;  %v1424_v0 = vpop.f32.mrb[3].mxu1 }
 0x26d   : > { %v1429_v56 = vmax.f32 %v1422_v53, 0.0  ;;  %v1381_v45 = vadd.f32 %v1380_v44, %v1324_v48  ;;  %v1382_v19 = vpop.f32.mrb[2].mxu0 }
 0x26e   : > { %v1436_v28 = vmul.f32 0.044715, %v1428_v42  ;;  %v1426_v33 = vmax.f32 %v1379_v16, 0.0  ;;  %v1383_v40 = vpop.f32.mrb[3].mxu0  ;;  %v1432_v26 = vmul.f32 0.5, %v1428_v42 }
 0x26f   : > { %v1437_v27 = vmul.f32 0.044715, %v1429_v56  ;;  %v1427_v13 = vmax.f32 %v1381_v45, 0.0  ;;  %v1433_v34 = vmul.f32 0.5, %v1429_v56 }
 0x270   : > { %v1440_v46 = vmul.f32 %v1436_v28, %v1428_v42  ;;  %v1434_v61 = vmul.f32 0.044715, %v1426_v33  ;;  %v1430_v18 = vmul.f32 0.5, %v1426_v33 }
 0x271   : > { %v1441_v2 = vmul.f32 %v1437_v27, %v1429_v56  ;;  %v1435_v41 = vmul.f32 0.044715, %v1427_v13  ;;  %v1431_v9 = vmul.f32 0.5, %v1427_v13 }
 0x272   : > { %v1444_v39 = vmul.f32 %v1440_v46, %v1428_v42  ;;  %v1438_v30 = vmul.f32 %v1434_v61, %v1426_v33 }
 0x273   : > { %v1445_v4 = vmul.f32 %v1441_v2, %v1429_v56  ;;  %v1439_v31 = vmul.f32 %v1435_v41, %v1427_v13 }
 0x274   : > { %v1448_v5 = vadd.f32 %v1444_v39, %v1428_v42  ;;  %v1442_v12 = vmul.f32 %v1438_v30, %v1426_v33 }
 0x275   : > { %v1449_v25 = vadd.f32 %v1445_v4, %v1429_v56  ;;  %v1443_v11 = vmul.f32 %v1439_v31, %v1427_v13 }
 0x276   : > { %v1452_v24 = vmul.f32 0.7978846, %v1448_v5  ;;  %v1446_v8 = vadd.f32 %v1442_v12, %v1426_v33 }
 0x277   : > { %v1453_v43 = vmul.f32 0.7978846, %v1449_v25  ;;  %v1447_v22 = vadd.f32 %v1443_v11, %v1427_v13 }
 0x278   : > { %v1450_v1 = vmul.f32 0.7978846, %v1446_v8  ;;  %1693 = vtanh.f32 %v1452_v24 }
 0x279   : > { %v1451_v3 = vmul.f32 0.7978846, %v1447_v22  ;;  %1695 = vtanh.f32 %v1453_v43 }
 0x27a   : > { %1697 = vtanh.f32 %v1450_v1 }
 0x27b   : > { %1699 = vtanh.f32 %v1451_v3 }
 0x282   : > { %v1694_v58 = vpop.eup %1693 }
 0x283   : > { %v1696_v36 = vpop.eup %1695  ;;  %v1460_v10 = vadd.f32 1.0, %v1694_v58 }
 0x284   : > { %v1698_v52 = vpop.eup %1697  ;;  %v1461_v55 = vadd.f32 1.0, %v1696_v36 }
 0x285   : > { %v1700_v35 = vpop.eup %1699  ;;  %v1458_v15 = vadd.f32 1.0, %v1698_v52  ;;  %v1464_v7 = vmul.f32 %v1460_v10, %v1432_v26 }
 0x286   : > { %v1459_v51 = vadd.f32 1.0, %v1700_v35  ;;  %v1465_v50 = vmul.f32 %v1461_v55, %v1433_v34 }
 0x287   : > { %v1462_v62 = vmul.f32 %v1458_v15, %v1430_v18  ;;  %v1468_v17 = vmul.f32 0.5, %v1464_v7 }
 0x288   : > { %v1463_v21 = vmul.f32 %v1459_v51, %v1431_v9  ;;  %v1469_v60 = vmul.f32 0.5, %v1465_v50 }
 0x289   : > { %v1466_v59 = vmul.f32 0.5, %v1462_v62  ;;  %1701 = vtanh.f32 %v1468_v17 }
 0x28a   : > { %v1467_v32 = vmul.f32 0.5, %v1463_v21  ;;  %1703 = vtanh.f32 %v1469_v60 }
 0x28b   : > { %1705 = vtanh.f32 %v1466_v59 }
 0x28c   : > { %1707 = vtanh.f32 %v1467_v32 }
 0x293   : > { %v1702_v49 = vpop.eup %1701 }
 0x294   : > { %v1704_v38 = vpop.eup %1703  ;;  %v1476_v20 = vadd.f32 1.0, %v1702_v49 }
 0x295   : > { %v1706_v14 = vpop.eup %1705  ;;  %v1477_v6 = vadd.f32 1.0, %v1704_v38 }
 0x296   : > { %v1708_v47 = vpop.eup %1707  ;;  %v1474_v48 = vadd.f32 1.0, %v1706_v14  ;;  %v1480_v23 = vmul.f32 0.5, %v1476_v20 }
 0x297   : > { %v1475_v54 = vadd.f32 1.0, %v1708_v47  ;;  %v1481_v29 = vmul.f32 0.5, %v1477_v6 }
 0x298   : > { %v1478_v53 = vmul.f32 0.5, %v1474_v48  ;;  %v1490_v63 = vadd.f32 %v1486_v37, %v1480_v23 }
 0x299   : > { %v1479_v57 = vmul.f32 0.5, %v1475_v54  ;;  %v1491_v42 = vadd.f32 %v1486_v37, %v1481_v29 }
 0x29a   : > { %v1488_v16 = vadd.f32 %v1486_v37, %v1478_v53  ;;  %1494 = vst [vmem:[%s332_s16 + $0x10] sm:$0xff] %v1490_v63 }
 0x29b   : > { %v1489_v44 = vadd.f32 %v1486_v37, %v1479_v57  ;;  %1495 = vst [vmem:[%s332_s16 + $0x18] sm:$0xff] %v1491_v42 }
 0x29c   : > { %1492 = vst [vmem:[%s332_s16] sm:$0xff] %v1488_v16 }
 0x29d   : > { %1493 = vst [vmem:[%s332_s16 + $0x8] sm:$0xff] %v1489_v44 }
 0x29e PF: > { %s15_s20 = sadd.s32 1, %s1731_s20   ;;  %s2874_s18 = smov %s1727_s19 }
 0x29f   : > { %p12_p5 = scmp.ge.s32.totalorder %s15_s20, 4   ;;  %s2875_s19 = smov %s2877_s21 }
 0x2a1   :  { %14 = sbr.rel (!%p12_p5) target bundleno = 2 (0x2), region = 73 }

</bundles_post_ra>
